<compile_context>
chip_gen: v6e
topology: v6e:2x2x1
jax: 0.10.0
libtpu: 0.0.40
codegen_flags: <defaults>
</compile_context>

<pallas_src>
import functools

import jax
import jax.numpy as jnp
from jax import lax
from jax.experimental import pallas as pl
from jax.experimental.pallas import tpu as pltpu


# ----------------------------- math / FFT helpers ---------------------------

def _gelu_tanh(x):
    return 0.5 * x * (1.0 + jnp.tanh(0.7978845608028654 * (x + 0.044715 * x * x * x)))


def fft2c(x):
    x = jnp.fft.ifftshift(x, axes=(-2, -1))
    x = jnp.fft.fft2(x, axes=(-2, -1), norm="ortho")
    return jnp.fft.fftshift(x, axes=(-2, -1))


def ifft2c(x):
    x = jnp.fft.ifftshift(x, axes=(-2, -1))
    x = jnp.fft.ifft2(x, axes=(-2, -1), norm="ortho")
    return jnp.fft.fftshift(x, axes=(-2, -1))


# ----------------------------- tiling / VMEM budget --------------------------

_MAX_LANE = 1024
_MAX_TILE_BYTES = 2 * 1024 * 1024            # ~512K f32 elements per block
_FALLBACK_PHYS_VMEM = 64 * 1024 * 1024       # v7x-safe if the query fails


def _phys_vmem_bytes():
    try:
        info = pltpu.get_tpu_info()
        v = int(getattr(info, "vmem_capacity_bytes", 0) or 0)
        if v > 0:
            return v
    except Exception:
        pass
    return _FALLBACK_PHYS_VMEM


def _kernel_limits(num_pipelined_bufs, num_scratch_bufs=0):
    """(tile_elems, vmem_limit_bytes) from chip VMEM and buffer count."""
    phys = _phys_vmem_bytes()
    vmem_limit = min(phys * 3 // 4, 96 * 1024 * 1024)
    usable = max(8 * 1024 * 1024, vmem_limit - 4 * 1024 * 1024)
    denom = max(1, 2 * num_pipelined_bufs + num_scratch_bufs)  # double buffering
    tile_bytes = max(8 * 128 * 4, min(_MAX_TILE_BYTES, usable // denom))
    return tile_bytes // 4, vmem_limit


def _choose_rl(flat):
    """Factor flat = R * L, L a multiple of 128; prefer R % 8 == 0 (full sublanes)."""
    assert flat % 128 == 0, (
        f"D*H*W*2={flat} must be a multiple of 128 for lane-dense tiling")
    cands = [l for l in range(128, min(_MAX_LANE, flat) + 1, 128) if flat % l == 0]
    aligned = [l for l in cands if (flat // l) % 8 == 0]
    lane = max(aligned) if aligned else min(cands)   # never starve sublanes for lanes
    return flat // lane, lane


def _pick_tr(rows, lane, batch, tile_elems, want_row_splits=False):
    """Row tile: a divisor of rows, multiple of 8 when possible, within budget."""
    max_tr = max(1, tile_elems // max(1, batch * lane))
    if rows <= max_tr:
        tr = rows
    else:
        tr = None
        for t in range(min(max_tr, rows), 7, -1):
            if rows % t == 0 and t % 8 == 0:
                tr = t
                break
        if tr is None:
            for t in range(min(max_tr, rows), 0, -1):
                if rows % t == 0:
                    tr = t
                    break
        if tr is None:
            tr = rows
    if want_row_splits and tr == rows and rows >= 16:
        # v7x megacore: give the "parallel" row axis >=2 steps if it stays aligned.
        for t in range(rows // 2, 7, -1):
            if rows % t == 0 and t % 8 == 0:
                tr = t
                break
    return tr


# ----------------------------- interleaved-lane helpers ----------------------

def _even_mask(shape):
    return (lax.broadcasted_iota(jnp.int32, shape, len(shape) - 1) % 2) == 0


def _dup_re(v, even, lane):
    # broadcast each pixel's real part to both lanes of its (re, im) pair
    return jnp.where(even, v, pltpu.roll(v, 1, v.ndim - 1))


def _dup_im(v, even, lane):
    return jnp.where(even, pltpu.roll(v, lane - 1, v.ndim - 1), v)


def _pair_swap(v, even, lane):
    return jnp.where(even, pltpu.roll(v, lane - 1, v.ndim - 1),
                     pltpu.roll(v, 1, v.ndim - 1))


def _cmul(a, b, even, sgn, lane):
    """Complex multiply a*b of interleaved re/im lane layouts."""
    return a * _dup_re(b, even, lane) + sgn * _pair_swap(a, even, lane) * _dup_im(b, even, lane)


def _cmul_conj(a, b, even, sgn, lane):
    """a * conj(b), interleaved."""
    return a * _dup_re(b, even, lane) - sgn * _pair_swap(a, even, lane) * _dup_im(b, even, lane)


# ----------------------------- Pallas kernels --------------------------------

def _sens_expand_kernel(x_ref, s_ref, c_ref, o_ref):
    # o = checkerboard * (x * S) for one coil tile (interleaved complex multiply).
    x = x_ref[...]
    s = s_ref[...]
    lane = x.shape[-1]
    even = _even_mask(x.shape)
    sgn = jnp.where(even, -1.0, 1.0)
    o_ref[...] = c_ref[...] * _cmul(x, s, even, sgn, lane)


def _mask_residual_kernel(k_ref, ku_ref, m_ref, c_ref, o_ref, *, gsign):
    # o = m * (gsign * m * k - checkerboard * ku): k-space data consistency with
    # the fftshift pair folded in as sign modulation.  Pure elementwise.
    m = m_ref[...]
    o_ref[...] = m * (gsign * (m * k_ref[...]) - c_ref[...] * ku_ref[...])


def _reduce_update_kernel(i_ref, s_ref, x_ref, c_ref, step_ref,
                          w1a_ref, w1b_ref, b1_ref, w2a_ref, w2b_ref, b2_ref,
                          o_ref, g_scr, *, gsign, scale, per):
    cidx = pl.program_id(1)
    x = x_ref[...]
    lane = x.shape[-1]
    even = _even_mask(x.shape)
    sgn = jnp.where(even, -1.0, 1.0)

    @pl.when(cidx == 0)
    def _():
        o_ref[...] = jnp.zeros_like(o_ref)
        g_scr[...] = jnp.where(even, b2_ref[0], b2_ref[1])

    # Coil reduction sum_c img_c * conj(S_c), accumulated directly into the
    # resident output block (its BlockSpec is coil-constant).
    o_ref[...] += _cmul_conj(i_ref[...], s_ref[...], even, sgn, lane)

    # Pointwise 2 -> hidden -> 2 MLP regularizer stand-in, spread over coil
    # steps: this step handles hidden units [cidx*per, (cidx+1)*per) of the
    # zero-padded weight tables (VPU/EUP burst hidden under memory-bound sweep).
    xr = _dup_re(x, even, lane)
    xi = _dup_im(x, even, lane)
    base = cidx * per

    def body(j, acc):
        idx = base + j
        h = _gelu_tanh(w1a_ref[idx] * xr + w1b_ref[idx] * xi + b1_ref[idx])
        return acc + jnp.where(even, w2a_ref[idx], w2b_ref[idx]) * h

    part = lax.fori_loop(0, per, body, jnp.zeros(x.shape, jnp.float32),
                         unroll=min(per, 8))
    g_scr[...] += part

    @pl.when(cidx == pl.num_programs(1) - 1)
    def _():
        red = (2.0 * gsign) * (c_ref[...] * o_ref[...])
        o_ref[...] = x - step_ref[0] * (red + scale * g_scr[...])


# ----------------------------- Pallas wrappers -------------------------------

_SMEM = pl.BlockSpec(memory_space=pltpu.MemorySpace.SMEM)


def _coil_img_specs(B, tr, L):
    coil = pl.BlockSpec((B, 1, tr, L), lambda r, c: (0, c, r, 0))
    img = pl.BlockSpec((B, 1, tr, L), lambda r, c: (0, 0, r, 0))   # coil-resident
    return coil, img


def sens_expand_mul(x_int, s_int, c2):
    B, Nc, R, L = s_int.shape
    tile_elems, vmem_limit = _kernel_limits(4)
    tr = _pick_tr(R, L, B, tile_elems)
    assert R % tr == 0
    coil, img = _coil_img_specs(B, tr, L)
    return pl.pallas_call(
        _sens_expand_kernel,
        out_shape=jax.ShapeDtypeStruct((B, Nc, R, L), jnp.float32),
        grid=(R // tr, Nc),
        in_specs=[img, coil, img],
        out_specs=coil,
        compiler_params=pltpu.CompilerParams(
            dimension_semantics=("parallel", "parallel"),
            vmem_limit_bytes=vmem_limit),
    )(x_int, s_int, c2)


def mask_residual(k_int, ku_int, m2, c2, gsign):
    B, Nc, R, L = k_int.shape
    tile_elems, vmem_limit = _kernel_limits(5)
    tr = _pick_tr(R, L, B, tile_elems)
    assert R % tr == 0
    coil, img = _coil_img_specs(B, tr, L)
    return pl.pallas_call(
        functools.partial(_mask_residual_kernel, gsign=gsign),
        out_shape=jax.ShapeDtypeStruct((B, Nc, R, L), jnp.float32),
        grid=(R // tr, Nc),
        in_specs=[coil, coil, img, img],
        out_specs=coil,
        compiler_params=pltpu.CompilerParams(
            dimension_semantics=("parallel", "parallel"),
            vmem_limit_bytes=vmem_limit),
    )(k_int, ku_int, m2, c2)


def reduce_update(i_int, s_int, x_int, c2, step, mlp, gsign, scale):
    B, Nc, R, L = s_int.shape
    tile_elems, vmem_limit = _kernel_limits(5, 1)
    tr = _pick_tr(R, L, B, tile_elems, want_row_splits=True)
    assert R % tr == 0
    coil, img = _coil_img_specs(B, tr, L)
    kernel = functools.partial(_reduce_update_kernel, gsign=gsign, scale=scale,
                               per=mlp["per"])
    return pl.pallas_call(
        kernel,
        out_shape=jax.ShapeDtypeStruct((B, 1, R, L), jnp.float32),
        grid=(R // tr, Nc),
        in_specs=[coil, coil, img, img,
                  _SMEM, _SMEM, _SMEM, _SMEM, _SMEM, _SMEM, _SMEM],
        out_specs=img,
        scratch_shapes=[pltpu.VMEM((B, 1, tr, L), jnp.float32)],
        compiler_params=pltpu.CompilerParams(
            dimension_semantics=("parallel", "arbitrary"),
            vmem_limit_bytes=vmem_limit),
    )(i_int, s_int, x_int, c2, step,
      mlp["w1a"], mlp["w1b"], mlp["b1"], mlp["w2a"], mlp["w2b"], mlp["b2"])


# ----------------------------- IRB forward -----------------------------------

def _interleaved_to_complex(v_int, shape5):
    B, Nc, D, H, W = shape5
    v = v_int.reshape(B, Nc, D, H, W, 2)
    return lax.complex(v[..., 0], v[..., 1])


def _complex_to_interleaved(z, R, L):
    B, Nc = z.shape[:2]
    v = jnp.stack([jnp.real(z), jnp.imag(z)], axis=-1)
    return v.reshape(B, Nc, R, L)


def _pad_mlp_params(params, n_coils):
    hidden = params["w1"].shape[0]
    per = -(-hidden // n_coils)                 # ceil(hidden / Nc)
    pad = per * n_coils - hidden
    f32 = jnp.float32
    return dict(
        per=per,
        w1a=jnp.pad(params["w1"][:, 0].astype(f32), (0, pad)),
        w1b=jnp.pad(params["w1"][:, 1].astype(f32), (0, pad)),
        b1=jnp.pad(params["b1"].astype(f32), (0, pad)),
        w2a=jnp.pad(params["w2"][0, :].astype(f32), (0, pad)),
        w2b=jnp.pad(params["w2"][1, :].astype(f32), (0, pad)),
        b2=params["b2"].astype(f32),
    )


def irb_forward(params, target_kspace_u, target_img_f, mask, sens_maps_updated,
                idx, gate, stepsize, *, scale=0.1):
    """Mirrors IRB.forward.  `idx` / `gate` are unused by the reference forward."""
    del idx, gate
    B, C, D, H, W, _ = target_img_f.shape
    assert C == 1
    Nc = sens_maps_updated.shape[1]
    flat = D * H * W * 2
    R, L = _choose_rl(flat)

    f32 = jnp.float32
    # Interleaved re/im lane layout: a free reshape of the (..., 2) boundary layout.
    x_int = target_img_f.astype(f32).reshape(B, 1, R, L)
    s_int = sens_maps_updated.astype(f32).reshape(B, Nc, R, L)
    ku_int = target_kspace_u.astype(f32).reshape(B, Nc, R, L)
    m2 = jnp.broadcast_to(mask.astype(f32), (B, 1, D, H, W, 2)).reshape(B, 1, R, L)

    even_hw = (H % 2 == 0) and (W % 2 == 0)
    if even_hw:
        # Centered FFTs folded into the Pallas kernels: the fftshift/ifftshift
        # pairs become a (-1)^(h+w) checkerboard plus a global sign, so only
        # the plain (uncentered) jnp.fft touches the coil data.
        ch = 1.0 - 2.0 * (jnp.arange(H, dtype=f32) % 2.0)
        cw = 1.0 - 2.0 * (jnp.arange(W, dtype=f32) % 2.0)
        chk = (ch[:, None] * cw[None, :])[None, None, None, :, :, None]
        c2 = jnp.broadcast_to(chk, (B, 1, D, H, W, 2)).reshape(B, 1, R, L)
        gsign = -1.0 if ((H // 2 + W // 2) % 2) else 1.0
        fwd_fft = lambda z: jnp.fft.fft2(z, axes=(-2, -1), norm="ortho")
        inv_fft = lambda z: jnp.fft.ifft2(z, axes=(-2, -1), norm="ortho")
    else:
        # Odd spatial dims: checkerboard identity does not hold; keep the shifts.
        c2 = jnp.ones((B, 1, R, L), f32)
        gsign = 1.0
        fwd_fft, inv_fft = fft2c, ifft2c

    # 1) sens_expand: per-coil complex multiply (+ checkerboard) in Pallas.
    e_int = sens_expand_mul(x_int, s_int, c2)
    # TODO(synk): the float<->complex hops around jnp.fft still cost one fused
    # elementwise pass each way (XLA bitcast_convert does not support complex).
    k = fwd_fft(_interleaved_to_complex(e_int, (B, Nc, D, H, W)))

    # 2) k-space data consistency in Pallas.
    r_int = mask_residual(_complex_to_interleaved(k, R, L), ku_int, m2, c2, gsign)

    # 3) sens_reduce (coil reduction) + MLP regularizer stand-in + update, fused.
    img = inv_fft(_interleaved_to_complex(r_int, (B, Nc, D, H, W)))
    i_int = _complex_to_interleaved(img, R, L)
    step = jnp.reshape(jnp.asarray(stepsize, f32), (1,))
    mlp = _pad_mlp_params(params, Nc)
    out_int = reduce_update(i_int, s_int, x_int, c2, step, mlp, gsign, scale)
    return out_int.reshape(B, 1, D, H, W, 2)


# ----------------------------- pure-JAX reference ----------------------------

def irb_reference(params, target_kspace_u, target_img_f, mask, sens_maps_updated,
                  stepsize, scale):
    xc = target_img_f[..., 0] + 1j * target_img_f[..., 1]
    sc = sens_maps_updated[..., 0] + 1j * sens_maps_updated[..., 1]
    kuc = target_kspace_u[..., 0] + 1j * target_kspace_u[..., 1]
    m = mask[..., 0]

    B, C, D, H, W = xc.shape
    x2 = jnp.concatenate([target_img_f[..., 0], target_img_f[..., 1]], axis=1)
    flat = x2.transpose(1, 0, 2, 3, 4).reshape(2, -1)
    h = jnp.dot(params["w1"], flat, precision=jax.lax.Precision.HIGHEST) \
        + params["b1"][:, None]
    h = _gelu_tanh(h)
    y = jnp.dot(params["w2"], h, precision=jax.lax.Precision.HIGHEST) \
        + params["b2"][:, None]
    y = y.reshape(2, B, D, H, W).transpose(1, 0, 2, 3, 4)
    g = y[:, 0:1] + 1j * y[:, 1:2]

    k = fft2c(xc * sc)
    r = m * (m * k - kuc)
    red = jnp.sum(ifft2c(r) * jnp.conj(sc), axis=1, keepdims=True)
    out = xc - stepsize * (2.0 * red + scale * g)
    return jnp.stack([out.real, out.imag], axis=-1)


# ----------------------------- main -------------------------------------------

if __name__ == "__main__":
    key = jax.random.PRNGKey(0)
    k0, k1, k2, k3, k4, k5, k6, k7 = jax.random.split(key, 8)

    # Small shapes: batch=1, coils_all=4, depth=2, H=W=16, embed_dim=32.
    B, Nc, D, H, W = 1, 4, 2, 16, 16
    embed_dim = 32
    scale = 0.1

    target_img_f = jax.random.normal(k0, (B, 1, D, H, W, 2), jnp.float32)
    target_kspace_u = jax.random.normal(k1, (B, Nc, D, H, W, 2), jnp.float32)
    sens_maps_updated = 0.5 * jax.random.normal(k2, (B, Nc, D, H, W, 2), jnp.float32)
    mask = (jax.random.uniform(k3, (W,)) > 0.5).astype(jnp.float32) \
        .reshape(1, 1, 1, 1, W, 1)
    stepsize = jnp.float32(0.05)
    idx = jnp.int32(0)        # unused in forward
    gate = jnp.float32(1.0)   # unused in forward

    params = {
        "w1": 0.1 * jax.random.normal(k4, (embed_dim, 2), jnp.float32),
        "b1": 0.01 * jax.random.normal(k6, (embed_dim,), jnp.float32),
        "w2": 0.1 * jax.random.normal(k5, (2, embed_dim), jnp.float32),
        "b2": 0.01 * jax.random.normal(k7, (2,), jnp.float32),
    }

    fwd = jax.jit(functools.partial(irb_forward, scale=scale))
    out = fwd(params, target_kspace_u, target_img_f, mask, sens_maps_updated,
              idx, gate, stepsize)
    out = jax.block_until_ready(out)

    ref = irb_reference(params, target_kspace_u, target_img_f, mask,
                        sens_maps_updated, stepsize, scale)

    assert out.shape == (B, 1, D, H, W, 2), out.shape
    assert jnp.allclose(out, ref, atol=1e-3, rtol=1e-3), \
        float(jnp.max(jnp.abs(out - ref)))
    print("KERNEL_OK")
</pallas_src>

<mosaic_0001>
module attributes {stable_mosaic.version = 11 : i64} {
  func.func @_sens_expand_kernel(%arg0: i32, %arg1: i32, %arg2: memref<1x1x8x128xf32, #tpu.memory_space<vmem>>, %arg3: memref<1x1x8x128xf32, #tpu.memory_space<vmem>>, %arg4: memref<1x1x8x128xf32, #tpu.memory_space<vmem>>, %arg5: memref<1x1x8x128xf32, #tpu.memory_space<vmem>>) attributes {dimension_semantics = [#tpu.dimension_semantics<parallel>, #tpu.dimension_semantics<parallel>], iteration_bounds = array<i64: 1, 4>, scalar_prefetch = 0 : i64, scratch_operands = 0 : i64, tpu.core_type = #tpu.core_type<tc>, window_params = [{transform_indices = @transform_0, window_bounds = array<i64: 1, 1, 8, 128>}, {transform_indices = @transform_1, window_bounds = array<i64: 1, 1, 8, 128>}, {transform_indices = @transform_2, window_bounds = array<i64: 1, 1, 8, 128>}, {transform_indices = @transform_3, window_bounds = array<i64: 1, 1, 8, 128>}]} {
    %c0 = arith.constant 0 : index
    %c0_0 = arith.constant 0 : index
    %c0_1 = arith.constant 0 : index
    %c0_2 = arith.constant 0 : index
    %0 = vector.load %arg2[%c0, %c0_0, %c0_1, %c0_2] : memref<1x1x8x128xf32, #tpu.memory_space<vmem>>, vector<1x1x8x128xf32>
    %c0_3 = arith.constant 0 : index
    %c0_4 = arith.constant 0 : index
    %c0_5 = arith.constant 0 : index
    %c0_6 = arith.constant 0 : index
    %1 = vector.load %arg3[%c0_3, %c0_4, %c0_5, %c0_6] : memref<1x1x8x128xf32, #tpu.memory_space<vmem>>, vector<1x1x8x128xf32>
    %2 = tpu.iota {dimensions = array<i32: 3>} : vector<1x1x8x128xi32>
    %c2_i32 = arith.constant 2 : i32
    %c0_i32 = arith.constant 0 : i32
    %3 = arith.cmpi eq, %c2_i32, %c0_i32 : i32
    %c1_i32 = arith.constant 1 : i32
    %4 = arith.select %3, %c1_i32, %c2_i32 : i32
    %5 = vector.broadcast %4 : i32 to vector<1x1x8x128xi32>
    %6 = arith.remsi %2, %5 : vector<1x1x8x128xi32>
    %c0_i32_7 = arith.constant 0 : i32
    %7 = vector.broadcast %c0_i32_7 : i32 to vector<1x1x8x128xi32>
    %8 = arith.cmpi ne, %6, %7 : vector<1x1x8x128xi32>
    %c0_i32_8 = arith.constant 0 : i32
    %9 = vector.broadcast %c0_i32_8 : i32 to vector<1x1x8x128xi32>
    %10 = arith.cmpi slt, %6, %9 : vector<1x1x8x128xi32>
    %c0_i32_9 = arith.constant 0 : i32
    %11 = arith.cmpi slt, %4, %c0_i32_9 : i32
    %12 = vector.broadcast %11 : i1 to vector<1x1x8x128xi1>
    %13 = vector.broadcast %12 : vector<1x1x8x128xi1> to vector<1x1x8x128xi1>
    %14 = arith.xori %10, %13 : vector<1x1x8x128xi1>
    %15 = arith.andi %14, %8 : vector<1x1x8x128xi1>
    %16 = vector.broadcast %4 : i32 to vector<1x1x8x128xi32>
    %17 = arith.addi %6, %16 : vector<1x1x8x128xi32>
    %18 = arith.select %15, %17, %6 : vector<1x1x8x128xi1>, vector<1x1x8x128xi32>
    %c0_i32_10 = arith.constant 0 : i32
    %19 = vector.broadcast %c0_i32_10 : i32 to vector<1x1x8x128xi32>
    %20 = arith.cmpi eq, %18, %19 : vector<1x1x8x128xi32>
    %cst = arith.constant -1.000000e+00 : f32
    %cst_11 = arith.constant 1.000000e+00 : f32
    %21 = vector.broadcast %cst : f32 to vector<1x1x8x128xf32>
    %22 = vector.broadcast %cst_11 : f32 to vector<1x1x8x128xf32>
    %23 = arith.select %20, %21, %22 : vector<1x1x8x128xi1>, vector<1x1x8x128xf32>
    %c0_12 = arith.constant 0 : index
    %c0_13 = arith.constant 0 : index
    %c0_14 = arith.constant 0 : index
    %c0_15 = arith.constant 0 : index
    %24 = vector.load %arg4[%c0_12, %c0_13, %c0_14, %c0_15] : memref<1x1x8x128xf32, #tpu.memory_space<vmem>>, vector<1x1x8x128xf32>
    %c1_i32_16 = arith.constant 1 : i32
    %25 = tpu.dynamic_rotate %1 by %c1_i32_16 dim 3 : vector<1x1x8x128xf32>, i32 -> vector<1x1x8x128xf32>
    %26 = arith.select %20, %1, %25 : vector<1x1x8x128xi1>, vector<1x1x8x128xf32>
    %27 = arith.mulf %0, %26 : vector<1x1x8x128xf32>
    %c127_i32 = arith.constant 127 : i32
    %28 = tpu.dynamic_rotate %0 by %c127_i32 dim 3 : vector<1x1x8x128xf32>, i32 -> vector<1x1x8x128xf32>
    %c1_i32_17 = arith.constant 1 : i32
    %29 = tpu.dynamic_rotate %0 by %c1_i32_17 dim 3 : vector<1x1x8x128xf32>, i32 -> vector<1x1x8x128xf32>
    %30 = arith.select %20, %28, %29 : vector<1x1x8x128xi1>, vector<1x1x8x128xf32>
    %31 = arith.mulf %23, %30 : vector<1x1x8x128xf32>
    %c127_i32_18 = arith.constant 127 : i32
    %32 = tpu.dynamic_rotate %1 by %c127_i32_18 dim 3 : vector<1x1x8x128xf32>, i32 -> vector<1x1x8x128xf32>
    %33 = arith.select %20, %32, %1 : vector<1x1x8x128xi1>, vector<1x1x8x128xf32>
    %34 = arith.mulf %31, %33 : vector<1x1x8x128xf32>
    %35 = arith.addf %27, %34 : vector<1x1x8x128xf32>
    %36 = arith.mulf %24, %35 : vector<1x1x8x128xf32>
    %c0_19 = arith.constant 0 : index
    %c0_20 = arith.constant 0 : index
    %c0_21 = arith.constant 0 : index
    %c0_22 = arith.constant 0 : index
    %37 = vector.load %arg5[%c0_19, %c0_20, %c0_21, %c0_22] : memref<1x1x8x128xf32, #tpu.memory_space<vmem>>, vector<1x1x8x128xf32>
    tpu.vector_store %arg5[%c0_19, %c0_20, %c0_21, %c0_22], %36 {strides = array<i32>} : memref<1x1x8x128xf32, #tpu.memory_space<vmem>>, vector<1x1x8x128xf32>,
    return
  }
  func.func @transform_0(%arg0: i32, %arg1: i32) -> (i32, i32, i32, i32) {
    %c0_i32 = arith.constant 0 : i32
    %c0_i32_0 = arith.constant 0 : i32
    %c0_i32_1 = arith.constant 0 : i32
    %c0_i32_2 = arith.constant 0 : i32
    return %c0_i32, %c0_i32_0, %arg0, %c0_i32_1 : i32, i32, i32, i32
  }
  func.func @transform_1(%arg0: i32, %arg1: i32) -> (i32, i32, i32, i32) {
    %c0_i32 = arith.constant 0 : i32
    %c0_i32_0 = arith.constant 0 : i32
    %c0_i32_1 = arith.constant 0 : i32
    return %c0_i32, %arg1, %arg0, %c0_i32_0 : i32, i32, i32, i32
  }
  func.func @transform_2(%arg0: i32, %arg1: i32) -> (i32, i32, i32, i32) {
    %c0_i32 = arith.constant 0 : i32
    %c0_i32_0 = arith.constant 0 : i32
    %c0_i32_1 = arith.constant 0 : i32
    %c0_i32_2 = arith.constant 0 : i32
    return %c0_i32, %c0_i32_0, %arg0, %c0_i32_1 : i32, i32, i32, i32
  }
  func.func @transform_3(%arg0: i32, %arg1: i32) -> (i32, i32, i32, i32) {
    %c0_i32 = arith.constant 0 : i32
    %c0_i32_0 = arith.constant 0 : i32
    %c0_i32_1 = arith.constant 0 : i32
    return %c0_i32, %arg1, %arg0, %c0_i32_0 : i32, i32, i32, i32
  }
}

module attributes {stable_mosaic.version = 11 : i64} {
  func.func @_mask_residual_kernel(%arg0: i32, %arg1: i32, %arg2: memref<1x1x8x128xf32, #tpu.memory_space<vmem>>, %arg3: memref<1x1x8x128xf32, #tpu.memory_space<vmem>>, %arg4: memref<1x1x8x128xf32, #tpu.memory_space<vmem>>, %arg5: memref<1x1x8x128xf32, #tpu.memory_space<vmem>>, %arg6: memref<1x1x8x128xf32, #tpu.memory_space<vmem>>) attributes {dimension_semantics = [#tpu.dimension_semantics<parallel>, #tpu.dimension_semantics<parallel>], iteration_bounds = array<i64: 1, 4>, scalar_prefetch = 0 : i64, scratch_operands = 0 : i64, tpu.core_type = #tpu.core_type<tc>, window_params = [{transform_indices = @transform_0, window_bounds = array<i64: 1, 1, 8, 128>}, {transform_indices = @transform_1, window_bounds = array<i64: 1, 1, 8, 128>}, {transform_indices = @transform_2, window_bounds = array<i64: 1, 1, 8, 128>}, {transform_indices = @transform_3, window_bounds = array<i64: 1, 1, 8, 128>}, {transform_indices = @transform_4, window_bounds = array<i64: 1, 1, 8, 128>}]} {
    %c0 = arith.constant 0 : index
    %c0_0 = arith.constant 0 : index
    %c0_1 = arith.constant 0 : index
    %c0_2 = arith.constant 0 : index
    %0 = vector.load %arg4[%c0, %c0_0, %c0_1, %c0_2] : memref<1x1x8x128xf32, #tpu.memory_space<vmem>>, vector<1x1x8x128xf32>
    %c0_3 = arith.constant 0 : index
    %c0_4 = arith.constant 0 : index
    %c0_5 = arith.constant 0 : index
    %c0_6 = arith.constant 0 : index
    %1 = vector.load %arg2[%c0_3, %c0_4, %c0_5, %c0_6] : memref<1x1x8x128xf32, #tpu.memory_space<vmem>>, vector<1x1x8x128xf32>
    %2 = arith.mulf %0, %1 : vector<1x1x8x128xf32>
    %cst = arith.constant 1.000000e+00 : f32
    %3 = vector.broadcast %cst : f32 to vector<1x1x8x128xf32>
    %4 = arith.mulf %3, %2 : vector<1x1x8x128xf32>
    %c0_7 = arith.constant 0 : index
    %c0_8 = arith.constant 0 : index
    %c0_9 = arith.constant 0 : index
    %c0_10 = arith.constant 0 : index
    %5 = vector.load %arg5[%c0_7, %c0_8, %c0_9, %c0_10] : memref<1x1x8x128xf32, #tpu.memory_space<vmem>>, vector<1x1x8x128xf32>
    %c0_11 = arith.constant 0 : index
    %c0_12 = arith.constant 0 : index
    %c0_13 = arith.constant 0 : index
    %c0_14 = arith.constant 0 : index
    %6 = vector.load %arg3[%c0_11, %c0_12, %c0_13, %c0_14] : memref<1x1x8x128xf32, #tpu.memory_space<vmem>>, vector<1x1x8x128xf32>
    %7 = arith.mulf %5, %6 : vector<1x1x8x128xf32>
    %8 = arith.subf %4, %7 : vector<1x1x8x128xf32>
    %9 = arith.mulf %0, %8 : vector<1x1x8x128xf32>
    %c0_15 = arith.constant 0 : index
    %c0_16 = arith.constant 0 : index
    %c0_17 = arith.constant 0 : index
    %c0_18 = arith.constant 0 : index
    %10 = vector.load %arg6[%c0_15, %c0_16, %c0_17, %c0_18] : memref<1x1x8x128xf32, #tpu.memory_space<vmem>>, vector<1x1x8x128xf32>
    tpu.vector_store %arg6[%c0_15, %c0_16, %c0_17, %c0_18], %9 {strides = array<i32>} : memref<1x1x8x128xf32, #tpu.memory_space<vmem>>, vector<1x1x8x128xf32>,
    return
  }
  func.func @transform_0(%arg0: i32, %arg1: i32) -> (i32, i32, i32, i32) {
    %c0_i32 = arith.constant 0 : i32
    %c0_i32_0 = arith.constant 0 : i32
    %c0_i32_1 = arith.constant 0 : i32
    return %c0_i32, %arg1, %arg0, %c0_i32_0 : i32, i32, i32, i32
  }
  func.func @transform_1(%arg0: i32, %arg1: i32) -> (i32, i32, i32, i32) {
    %c0_i32 = arith.constant 0 : i32
    %c0_i32_0 = arith.constant 0 : i32
    %c0_i32_1 = arith.constant 0 : i32
    return %c0_i32, %arg1, %arg0, %c0_i32_0 : i32, i32, i32, i32
  }
  func.func @transform_2(%arg0: i32, %arg1: i32) -> (i32, i32, i32, i32) {
    %c0_i32 = arith.constant 0 : i32
    %c0_i32_0 = arith.constant 0 : i32
    %c0_i32_1 = arith.constant 0 : i32
    %c0_i32_2 = arith.constant 0 : i32
    return %c0_i32, %c0_i32_0, %arg0, %c0_i32_1 : i32, i32, i32, i32
  }
  func.func @transform_3(%arg0: i32, %arg1: i32) -> (i32, i32, i32, i32) {
    %c0_i32 = arith.constant 0 : i32
    %c0_i32_0 = arith.constant 0 : i32
    %c0_i32_1 = arith.constant 0 : i32
    %c0_i32_2 = arith.constant 0 : i32
    return %c0_i32, %c0_i32_0, %arg0, %c0_i32_1 : i32, i32, i32, i32
  }
  func.func @transform_4(%arg0: i32, %arg1: i32) -> (i32, i32, i32, i32) {
    %c0_i32 = arith.constant 0 : i32
    %c0_i32_0 = arith.constant 0 : i32
    %c0_i32_1 = arith.constant 0 : i32
    return %c0_i32, %arg1, %arg0, %c0_i32_0 : i32, i32, i32, i32
  }
}

module attributes {stable_mosaic.version = 11 : i64} {
  func.func @_reduce_update_kernel(%arg0: i32, %arg1: i32, %arg2: memref<1x1x8x128xf32, #tpu.memory_space<vmem>>, %arg3: memref<1x1x8x128xf32, #tpu.memory_space<vmem>>, %arg4: memref<1x1x8x128xf32, #tpu.memory_space<vmem>>, %arg5: memref<1x1x8x128xf32, #tpu.memory_space<vmem>>, %arg6: memref<1xf32, #tpu.memory_space<smem>>, %arg7: memref<32xf32, #tpu.memory_space<smem>>, %arg8: memref<32xf32, #tpu.memory_space<smem>>, %arg9: memref<32xf32, #tpu.memory_space<smem>>, %arg10: memref<32xf32, #tpu.memory_space<smem>>, %arg11: memref<32xf32, #tpu.memory_space<smem>>, %arg12: memref<2xf32, #tpu.memory_space<smem>>, %arg13: memref<1x1x8x128xf32, #tpu.memory_space<vmem>>, %arg14: memref<1x1x8x128xf32, #tpu.memory_space<vmem>>) attributes {dimension_semantics = [#tpu.dimension_semantics<parallel>, #tpu.dimension_semantics<arbitrary>], iteration_bounds = array<i64: 1, 4>, scalar_prefetch = 0 : i64, scratch_operands = 1 : i64, tpu.core_type = #tpu.core_type<tc>, window_params = [{transform_indices = @transform_0, window_bounds = array<i64: 1, 1, 8, 128>}, {transform_indices = @transform_1, window_bounds = array<i64: 1, 1, 8, 128>}, {transform_indices = @transform_2, window_bounds = array<i64: 1, 1, 8, 128>}, {transform_indices = @transform_3, window_bounds = array<i64: 1, 1, 8, 128>}, {transform_indices = @transform_4, window_bounds = array<i64: 1>}, {transform_indices = @transform_5, window_bounds = array<i64: 32>}, {transform_indices = @transform_6, window_bounds = array<i64: 32>}, {transform_indices = @transform_7, window_bounds = array<i64: 32>}, {transform_indices = @transform_8, window_bounds = array<i64: 32>}, {transform_indices = @transform_9, window_bounds = array<i64: 32>}, {transform_indices = @transform_10, window_bounds = array<i64: 2>}, {transform_indices = @transform_11, window_bounds = array<i64: 1, 1, 8, 128>}]} {
    %c0 = arith.constant 0 : index
    %c0_0 = arith.constant 0 : index
    %c0_1 = arith.constant 0 : index
    %c0_2 = arith.constant 0 : index
    %0 = vector.load %arg4[%c0, %c0_0, %c0_1, %c0_2] : memref<1x1x8x128xf32, #tpu.memory_space<vmem>>, vector<1x1x8x128xf32>
    %1 = tpu.iota {dimensions = array<i32: 3>} : vector<1x1x8x128xi32>
    %c2_i32 = arith.constant 2 : i32
    %c0_i32 = arith.constant 0 : i32
    %2 = arith.cmpi eq, %c2_i32, %c0_i32 : i32
    %c1_i32 = arith.constant 1 : i32
    %3 = arith.select %2, %c1_i32, %c2_i32 : i32
    %4 = vector.broadcast %3 : i32 to vector<1x1x8x128xi32>
    %5 = arith.remsi %1, %4 : vector<1x1x8x128xi32>
    %c0_i32_3 = arith.constant 0 : i32
    %6 = vector.broadcast %c0_i32_3 : i32 to vector<1x1x8x128xi32>
    %7 = arith.cmpi ne, %5, %6 : vector<1x1x8x128xi32>
    %c0_i32_4 = arith.constant 0 : i32
    %8 = vector.broadcast %c0_i32_4 : i32 to vector<1x1x8x128xi32>
    %9 = arith.cmpi slt, %5, %8 : vector<1x1x8x128xi32>
    %c0_i32_5 = arith.constant 0 : i32
    %10 = arith.cmpi slt, %3, %c0_i32_5 : i32
    %11 = vector.broadcast %10 : i1 to vector<1x1x8x128xi1>
    %12 = vector.broadcast %11 : vector<1x1x8x128xi1> to vector<1x1x8x128xi1>
    %13 = arith.xori %9, %12 : vector<1x1x8x128xi1>
    %14 = arith.andi %13, %7 : vector<1x1x8x128xi1>
    %15 = vector.broadcast %3 : i32 to vector<1x1x8x128xi32>
    %16 = arith.addi %5, %15 : vector<1x1x8x128xi32>
    %17 = arith.select %14, %16, %5 : vector<1x1x8x128xi1>, vector<1x1x8x128xi32>
    %c0_i32_6 = arith.constant 0 : i32
    %18 = vector.broadcast %c0_i32_6 : i32 to vector<1x1x8x128xi32>
    %19 = arith.cmpi eq, %17, %18 : vector<1x1x8x128xi32>
    %cst = arith.constant -1.000000e+00 : f32
    %cst_7 = arith.constant 1.000000e+00 : f32
    %20 = vector.broadcast %cst : f32 to vector<1x1x8x128xf32>
    %21 = vector.broadcast %cst_7 : f32 to vector<1x1x8x128xf32>
    %22 = arith.select %19, %20, %21 : vector<1x1x8x128xi1>, vector<1x1x8x128xf32>
    %c0_i32_8 = arith.constant 0 : i32
    %23 = arith.cmpi eq, %arg1, %c0_i32_8 : i32
    %24 = arith.extui %23 : i1 to i32
    %c0_i32_9 = arith.constant 0 : i32
    %25 = arith.cmpi ne, %24, %c0_i32_9 : i32
    scf.if %25 {
      %cst_78 = arith.constant 0.000000e+00 : f32
      %342 = vector.broadcast %cst_78 : f32 to vector<1x1x8x128xf32>
      %c0_79 = arith.constant 0 : index
      %c0_80 = arith.constant 0 : index
      %c0_81 = arith.constant 0 : index
      %c0_82 = arith.constant 0 : index
      %343 = vector.load %arg13[%c0_79, %c0_80, %c0_81, %c0_82] : memref<1x1x8x128xf32, #tpu.memory_space<vmem>>, vector<1x1x8x128xf32>
      tpu.vector_store %arg13[%c0_79, %c0_80, %c0_81, %c0_82], %342 {strides = array<i32>} : memref<1x1x8x128xf32, #tpu.memory_space<vmem>>, vector<1x1x8x128xf32>,
      %c0_83 = arith.constant 0 : index
      %344 = memref.load %arg12[%c0_83] : memref<2xf32, #tpu.memory_space<smem>>
      %c1 = arith.constant 1 : index
      %345 = memref.load %arg12[%c1] : memref<2xf32, #tpu.memory_space<smem>>
      %346 = vector.broadcast %344 : f32 to vector<1x1x8x128xf32>
      %347 = vector.broadcast %345 : f32 to vector<1x1x8x128xf32>
      %348 = arith.select %19, %346, %347 : vector<1x1x8x128xi1>, vector<1x1x8x128xf32>
      %c0_84 = arith.constant 0 : index
      %c0_85 = arith.constant 0 : index
      %c0_86 = arith.constant 0 : index
      %c0_87 = arith.constant 0 : index
      %349 = vector.load %arg14[%c0_84, %c0_85, %c0_86, %c0_87] : memref<1x1x8x128xf32, #tpu.memory_space<vmem>>, vector<1x1x8x128xf32>
      tpu.vector_store %arg14[%c0_84, %c0_85, %c0_86, %c0_87], %348 {strides = array<i32>} : memref<1x1x8x128xf32, #tpu.memory_space<vmem>>, vector<1x1x8x128xf32>,
    } else {
    }
    %c0_10 = arith.constant 0 : index
    %c0_11 = arith.constant 0 : index
    %c0_12 = arith.constant 0 : index
    %c0_13 = arith.constant 0 : index
    %26 = vector.load %arg13[%c0_10, %c0_11, %c0_12, %c0_13] : memref<1x1x8x128xf32, #tpu.memory_space<vmem>>, vector<1x1x8x128xf32>
    %c0_14 = arith.constant 0 : index
    %c0_15 = arith.constant 0 : index
    %c0_16 = arith.constant 0 : index
    %c0_17 = arith.constant 0 : index
    %27 = vector.load %arg2[%c0_14, %c0_15, %c0_16, %c0_17] : memref<1x1x8x128xf32, #tpu.memory_space<vmem>>, vector<1x1x8x128xf32>
    %c0_18 = arith.constant 0 : index
    %c0_19 = arith.constant 0 : index
    %c0_20 = arith.constant 0 : index
    %c0_21 = arith.constant 0 : index
    %28 = vector.load %arg3[%c0_18, %c0_19, %c0_20, %c0_21] : memref<1x1x8x128xf32, #tpu.memory_space<vmem>>, vector<1x1x8x128xf32>
    %c1_i32_22 = arith.constant 1 : i32
    %29 = tpu.dynamic_rotate %28 by %c1_i32_22 dim 3 : vector<1x1x8x128xf32>, i32 -> vector<1x1x8x128xf32>
    %30 = arith.select %19, %28, %29 : vector<1x1x8x128xi1>, vector<1x1x8x128xf32>
    %31 = arith.mulf %27, %30 : vector<1x1x8x128xf32>
    %c127_i32 = arith.constant 127 : i32
    %32 = tpu.dynamic_rotate %27 by %c127_i32 dim 3 : vector<1x1x8x128xf32>, i32 -> vector<1x1x8x128xf32>
    %c1_i32_23 = arith.constant 1 : i32
    %33 = tpu.dynamic_rotate %27 by %c1_i32_23 dim 3 : vector<1x1x8x128xf32>, i32 -> vector<1x1x8x128xf32>
    %34 = arith.select %19, %32, %33 : vector<1x1x8x128xi1>, vector<1x1x8x128xf32>
    %35 = arith.mulf %22, %34 : vector<1x1x8x128xf32>
    %c127_i32_24 = arith.constant 127 : i32
    %36 = tpu.dynamic_rotate %28 by %c127_i32_24 dim 3 : vector<1x1x8x128xf32>, i32 -> vector<1x1x8x128xf32>
    %37 = arith.select %19, %36, %28 : vector<1x1x8x128xi1>, vector<1x1x8x128xf32>
    %38 = arith.mulf %35, %37 : vector<1x1x8x128xf32>
    %39 = arith.subf %31, %38 : vector<1x1x8x128xf32>
    %40 = arith.addf %26, %39 : vector<1x1x8x128xf32>
    %c0_25 = arith.constant 0 : index
    %c0_26 = arith.constant 0 : index
    %c0_27 = arith.constant 0 : index
    %c0_28 = arith.constant 0 : index
    %41 = vector.load %arg13[%c0_25, %c0_26, %c0_27, %c0_28] : memref<1x1x8x128xf32, #tpu.memory_space<vmem>>, vector<1x1x8x128xf32>
    tpu.vector_store %arg13[%c0_25, %c0_26, %c0_27, %c0_28], %40 {strides = array<i32>} : memref<1x1x8x128xf32, #tpu.memory_space<vmem>>, vector<1x1x8x128xf32>,
    %c1_i32_29 = arith.constant 1 : i32
    %42 = tpu.dynamic_rotate %0 by %c1_i32_29 dim 3 : vector<1x1x8x128xf32>, i32 -> vector<1x1x8x128xf32>
    %43 = arith.select %19, %0, %42 : vector<1x1x8x128xi1>, vector<1x1x8x128xf32>
    %c127_i32_30 = arith.constant 127 : i32
    %44 = tpu.dynamic_rotate %0 by %c127_i32_30 dim 3 : vector<1x1x8x128xf32>, i32 -> vector<1x1x8x128xf32>
    %45 = arith.select %19, %44, %0 : vector<1x1x8x128xi1>, vector<1x1x8x128xf32>
    %c8_i32 = arith.constant 8 : i32
    %46 = arith.muli %arg1, %c8_i32 : i32
    %cst_31 = arith.constant 0.000000e+00 : f32
    %47 = vector.broadcast %cst_31 : f32 to vector<1x1x8x128xf32>
    %c0_i32_32 = arith.constant 0 : i32
    %48 = arith.addi %46, %c0_i32_32 : i32
    %49 = arith.index_cast %48 : i32 to index
    %50 = memref.load %arg7[%49] : memref<32xf32, #tpu.memory_space<smem>>
    %51 = vector.broadcast %50 : f32 to vector<1x1x8x128xf32>
    %52 = arith.mulf %51, %43 : vector<1x1x8x128xf32>
    %53 = arith.index_cast %48 : i32 to index
    %54 = memref.load %arg8[%53] : memref<32xf32, #tpu.memory_space<smem>>
    %55 = vector.broadcast %54 : f32 to vector<1x1x8x128xf32>
    %56 = arith.mulf %55, %45 : vector<1x1x8x128xf32>
    %57 = arith.addf %52, %56 : vector<1x1x8x128xf32>
    %58 = arith.index_cast %48 : i32 to index
    %59 = memref.load %arg9[%58] : memref<32xf32, #tpu.memory_space<smem>>
    %60 = vector.broadcast %59 : f32 to vector<1x1x8x128xf32>
    %61 = arith.addf %57, %60 : vector<1x1x8x128xf32>
    %cst_33 = arith.constant 5.000000e-01 : f32
    %62 = vector.broadcast %cst_33 : f32 to vector<1x1x8x128xf32>
    %63 = arith.mulf %62, %61 : vector<1x1x8x128xf32>
    %cst_34 = arith.constant 4.471500e-02 : f32
    %64 = vector.broadcast %cst_34 : f32 to vector<1x1x8x128xf32>
    %65 = arith.mulf %64, %61 : vector<1x1x8x128xf32>
    %66 = arith.mulf %65, %61 : vector<1x1x8x128xf32>
    %67 = arith.mulf %66, %61 : vector<1x1x8x128xf32>
    %68 = arith.addf %61, %67 : vector<1x1x8x128xf32>
    %cst_35 = arith.constant 0.797884583 : f32
    %69 = vector.broadcast %cst_35 : f32 to vector<1x1x8x128xf32>
    %70 = arith.mulf %69, %68 : vector<1x1x8x128xf32>
    %71 = math.tanh %70 : vector<1x1x8x128xf32>
    %cst_36 = arith.constant 1.000000e+00 : f32
    %72 = vector.broadcast %cst_36 : f32 to vector<1x1x8x128xf32>
    %73 = arith.addf %72, %71 : vector<1x1x8x128xf32>
    %74 = arith.mulf %63, %73 : vector<1x1x8x128xf32>
    %75 = arith.index_cast %48 : i32 to index
    %76 = memref.load %arg10[%75] : memref<32xf32, #tpu.memory_space<smem>>
    %77 = arith.index_cast %48 : i32 to index
    %78 = memref.load %arg11[%77] : memref<32xf32, #tpu.memory_space<smem>>
    %79 = vector.broadcast %76 : f32 to vector<1x1x8x128xf32>
    %80 = vector.broadcast %78 : f32 to vector<1x1x8x128xf32>
    %81 = arith.select %19, %79, %80 : vector<1x1x8x128xi1>, vector<1x1x8x128xf32>
    %82 = arith.mulf %81, %74 : vector<1x1x8x128xf32>
    %83 = arith.addf %47, %82 : vector<1x1x8x128xf32>
    %c1_i32_37 = arith.constant 1 : i32
    %84 = arith.addi %46, %c1_i32_37 : i32
    %85 = arith.index_cast %84 : i32 to index
    %86 = memref.load %arg7[%85] : memref<32xf32, #tpu.memory_space<smem>>
    %87 = vector.broadcast %86 : f32 to vector<1x1x8x128xf32>
    %88 = arith.mulf %87, %43 : vector<1x1x8x128xf32>
    %89 = arith.index_cast %84 : i32 to index
    %90 = memref.load %arg8[%89] : memref<32xf32, #tpu.memory_space<smem>>
    %91 = vector.broadcast %90 : f32 to vector<1x1x8x128xf32>
    %92 = arith.mulf %91, %45 : vector<1x1x8x128xf32>
    %93 = arith.addf %88, %92 : vector<1x1x8x128xf32>
    %94 = arith.index_cast %84 : i32 to index
    %95 = memref.load %arg9[%94] : memref<32xf32, #tpu.memory_space<smem>>
    %96 = vector.broadcast %95 : f32 to vector<1x1x8x128xf32>
    %97 = arith.addf %93, %96 : vector<1x1x8x128xf32>
    %cst_38 = arith.constant 5.000000e-01 : f32
    %98 = vector.broadcast %cst_38 : f32 to vector<1x1x8x128xf32>
    %99 = arith.mulf %98, %97 : vector<1x1x8x128xf32>
    %cst_39 = arith.constant 4.471500e-02 : f32
    %100 = vector.broadcast %cst_39 : f32 to vector<1x1x8x128xf32>
    %101 = arith.mulf %100, %97 : vector<1x1x8x128xf32>
    %102 = arith.mulf %101, %97 : vector<1x1x8x128xf32>
    %103 = arith.mulf %102, %97 : vector<1x1x8x128xf32>
    %104 = arith.addf %97, %103 : vector<1x1x8x128xf32>
    %cst_40 = arith.constant 0.797884583 : f32
    %105 = vector.broadcast %cst_40 : f32 to vector<1x1x8x128xf32>
    %106 = arith.mulf %105, %104 : vector<1x1x8x128xf32>
    %107 = math.tanh %106 : vector<1x1x8x128xf32>
    %cst_41 = arith.constant 1.000000e+00 : f32
    %108 = vector.broadcast %cst_41 : f32 to vector<1x1x8x128xf32>
    %109 = arith.addf %108, %107 : vector<1x1x8x128xf32>
    %110 = arith.mulf %99, %109 : vector<1x1x8x128xf32>
    %111 = arith.index_cast %84 : i32 to index
    %112 = memref.load %arg10[%111] : memref<32xf32, #tpu.memory_space<smem>>
    %113 = arith.index_cast %84 : i32 to index
    %114 = memref.load %arg11[%113] : memref<32xf32, #tpu.memory_space<smem>>
    %115 = vector.broadcast %112 : f32 to vector<1x1x8x128xf32>
    %116 = vector.broadcast %114 : f32 to vector<1x1x8x128xf32>
    %117 = arith.select %19, %115, %116 : vector<1x1x8x128xi1>, vector<1x1x8x128xf32>
    %118 = arith.mulf %117, %110 : vector<1x1x8x128xf32>
    %119 = arith.addf %83, %118 : vector<1x1x8x128xf32>
    %c2_i32_42 = arith.constant 2 : i32
    %120 = arith.addi %46, %c2_i32_42 : i32
    %121 = arith.index_cast %120 : i32 to index
    %122 = memref.load %arg7[%121] : memref<32xf32, #tpu.memory_space<smem>>
    %123 = vector.broadcast %122 : f32 to vector<1x1x8x128xf32>
    %124 = arith.mulf %123, %43 : vector<1x1x8x128xf32>
    %125 = arith.index_cast %120 : i32 to index
    %126 = memref.load %arg8[%125] : memref<32xf32, #tpu.memory_space<smem>>
    %127 = vector.broadcast %126 : f32 to vector<1x1x8x128xf32>
    %128 = arith.mulf %127, %45 : vector<1x1x8x128xf32>
    %129 = arith.addf %124, %128 : vector<1x1x8x128xf32>
    %130 = arith.index_cast %120 : i32 to index
    %131 = memref.load %arg9[%130] : memref<32xf32, #tpu.memory_space<smem>>
    %132 = vector.broadcast %131 : f32 to vector<1x1x8x128xf32>
    %133 = arith.addf %129, %132 : vector<1x1x8x128xf32>
    %cst_43 = arith.constant 5.000000e-01 : f32
    %134 = vector.broadcast %cst_43 : f32 to vector<1x1x8x128xf32>
    %135 = arith.mulf %134, %133 : vector<1x1x8x128xf32>
    %cst_44 = arith.constant 4.471500e-02 : f32
    %136 = vector.broadcast %cst_44 : f32 to vector<1x1x8x128xf32>
    %137 = arith.mulf %136, %133 : vector<1x1x8x128xf32>
    %138 = arith.mulf %137, %133 : vector<1x1x8x128xf32>
    %139 = arith.mulf %138, %133 : vector<1x1x8x128xf32>
    %140 = arith.addf %133, %139 : vector<1x1x8x128xf32>
    %cst_45 = arith.constant 0.797884583 : f32
    %141 = vector.broadcast %cst_45 : f32 to vector<1x1x8x128xf32>
    %142 = arith.mulf %141, %140 : vector<1x1x8x128xf32>
    %143 = math.tanh %142 : vector<1x1x8x128xf32>
    %cst_46 = arith.constant 1.000000e+00 : f32
    %144 = vector.broadcast %cst_46 : f32 to vector<1x1x8x128xf32>
    %145 = arith.addf %144, %143 : vector<1x1x8x128xf32>
    %146 = arith.mulf %135, %145 : vector<1x1x8x128xf32>
    %147 = arith.index_cast %120 : i32 to index
    %148 = memref.load %arg10[%147] : memref<32xf32, #tpu.memory_space<smem>>
    %149 = arith.index_cast %120 : i32 to index
    %150 = memref.load %arg11[%149] : memref<32xf32, #tpu.memory_space<smem>>
    %151 = vector.broadcast %148 : f32 to vector<1x1x8x128xf32>
    %152 = vector.broadcast %150 : f32 to vector<1x1x8x128xf32>
    %153 = arith.select %19, %151, %152 : vector<1x1x8x128xi1>, vector<1x1x8x128xf32>
    %154 = arith.mulf %153, %146 : vector<1x1x8x128xf32>
    %155 = arith.addf %119, %154 : vector<1x1x8x128xf32>
    %c3_i32 = arith.constant 3 : i32
    %156 = arith.addi %46, %c3_i32 : i32
    %157 = arith.index_cast %156 : i32 to index
    %158 = memref.load %arg7[%157] : memref<32xf32, #tpu.memory_space<smem>>
    %159 = vector.broadcast %158 : f32 to vector<1x1x8x128xf32>
    %160 = arith.mulf %159, %43 : vector<1x1x8x128xf32>
    %161 = arith.index_cast %156 : i32 to index
    %162 = memref.load %arg8[%161] : memref<32xf32, #tpu.memory_space<smem>>
    %163 = vector.broadcast %162 : f32 to vector<1x1x8x128xf32>
    %164 = arith.mulf %163, %45 : vector<1x1x8x128xf32>
    %165 = arith.addf %160, %164 : vector<1x1x8x128xf32>
    %166 = arith.index_cast %156 : i32 to index
    %167 = memref.load %arg9[%166] : memref<32xf32, #tpu.memory_space<smem>>
    %168 = vector.broadcast %167 : f32 to vector<1x1x8x128xf32>
    %169 = arith.addf %165, %168 : vector<1x1x8x128xf32>
    %cst_47 = arith.constant 5.000000e-01 : f32
    %170 = vector.broadcast %cst_47 : f32 to vector<1x1x8x128xf32>
    %171 = arith.mulf %170, %169 : vector<1x1x8x128xf32>
    %cst_48 = arith.constant 4.471500e-02 : f32
    %172 = vector.broadcast %cst_48 : f32 to vector<1x1x8x128xf32>
    %173 = arith.mulf %172, %169 : vector<1x1x8x128xf32>
    %174 = arith.mulf %173, %169 : vector<1x1x8x128xf32>
    %175 = arith.mulf %174, %169 : vector<1x1x8x128xf32>
    %176 = arith.addf %169, %175 : vector<1x1x8x128xf32>
    %cst_49 = arith.constant 0.797884583 : f32
    %177 = vector.broadcast %cst_49 : f32 to vector<1x1x8x128xf32>
    %178 = arith.mulf %177, %176 : vector<1x1x8x128xf32>
    %179 = math.tanh %178 : vector<1x1x8x128xf32>
    %cst_50 = arith.constant 1.000000e+00 : f32
    %180 = vector.broadcast %cst_50 : f32 to vector<1x1x8x128xf32>
    %181 = arith.addf %180, %179 : vector<1x1x8x128xf32>
    %182 = arith.mulf %171, %181 : vector<1x1x8x128xf32>
    %183 = arith.index_cast %156 : i32 to index
    %184 = memref.load %arg10[%183] : memref<32xf32, #tpu.memory_space<smem>>
    %185 = arith.index_cast %156 : i32 to index
    %186 = memref.load %arg11[%185] : memref<32xf32, #tpu.memory_space<smem>>
    %187 = vector.broadcast %184 : f32 to vector<1x1x8x128xf32>
    %188 = vector.broadcast %186 : f32 to vector<1x1x8x128xf32>
    %189 = arith.select %19, %187, %188 : vector<1x1x8x128xi1>, vector<1x1x8x128xf32>
    %190 = arith.mulf %189, %182 : vector<1x1x8x128xf32>
    %191 = arith.addf %155, %190 : vector<1x1x8x128xf32>
    %c4_i32 = arith.constant 4 : i32
    %192 = arith.addi %46, %c4_i32 : i32
    %193 = arith.index_cast %192 : i32 to index
    %194 = memref.load %arg7[%193] : memref<32xf32, #tpu.memory_space<smem>>
    %195 = vector.broadcast %194 : f32 to vector<1x1x8x128xf32>
    %196 = arith.mulf %195, %43 : vector<1x1x8x128xf32>
    %197 = arith.index_cast %192 : i32 to index
    %198 = memref.load %arg8[%197] : memref<32xf32, #tpu.memory_space<smem>>
    %199 = vector.broadcast %198 : f32 to vector<1x1x8x128xf32>
    %200 = arith.mulf %199, %45 : vector<1x1x8x128xf32>
    %201 = arith.addf %196, %200 : vector<1x1x8x128xf32>
    %202 = arith.index_cast %192 : i32 to index
    %203 = memref.load %arg9[%202] : memref<32xf32, #tpu.memory_space<smem>>
    %204 = vector.broadcast %203 : f32 to vector<1x1x8x128xf32>
    %205 = arith.addf %201, %204 : vector<1x1x8x128xf32>
    %cst_51 = arith.constant 5.000000e-01 : f32
    %206 = vector.broadcast %cst_51 : f32 to vector<1x1x8x128xf32>
    %207 = arith.mulf %206, %205 : vector<1x1x8x128xf32>
    %cst_52 = arith.constant 4.471500e-02 : f32
    %208 = vector.broadcast %cst_52 : f32 to vector<1x1x8x128xf32>
    %209 = arith.mulf %208, %205 : vector<1x1x8x128xf32>
    %210 = arith.mulf %209, %205 : vector<1x1x8x128xf32>
    %211 = arith.mulf %210, %205 : vector<1x1x8x128xf32>
    %212 = arith.addf %205, %211 : vector<1x1x8x128xf32>
    %cst_53 = arith.constant 0.797884583 : f32
    %213 = vector.broadcast %cst_53 : f32 to vector<1x1x8x128xf32>
    %214 = arith.mulf %213, %212 : vector<1x1x8x128xf32>
    %215 = math.tanh %214 : vector<1x1x8x128xf32>
    %cst_54 = arith.constant 1.000000e+00 : f32
    %216 = vector.broadcast %cst_54 : f32 to vector<1x1x8x128xf32>
    %217 = arith.addf %216, %215 : vector<1x1x8x128xf32>
    %218 = arith.mulf %207, %217 : vector<1x1x8x128xf32>
    %219 = arith.index_cast %192 : i32 to index
    %220 = memref.load %arg10[%219] : memref<32xf32, #tpu.memory_space<smem>>
    %221 = arith.index_cast %192 : i32 to index
    %222 = memref.load %arg11[%221] : memref<32xf32, #tpu.memory_space<smem>>
    %223 = vector.broadcast %220 : f32 to vector<1x1x8x128xf32>
    %224 = vector.broadcast %222 : f32 to vector<1x1x8x128xf32>
    %225 = arith.select %19, %223, %224 : vector<1x1x8x128xi1>, vector<1x1x8x128xf32>
    %226 = arith.mulf %225, %218 : vector<1x1x8x128xf32>
    %227 = arith.addf %191, %226 : vector<1x1x8x128xf32>
    %c5_i32 = arith.constant 5 : i32
    %228 = arith.addi %46, %c5_i32 : i32
    %229 = arith.index_cast %228 : i32 to index
    %230 = memref.load %arg7[%229] : memref<32xf32, #tpu.memory_space<smem>>
    %231 = vector.broadcast %230 : f32 to vector<1x1x8x128xf32>
    %232 = arith.mulf %231, %43 : vector<1x1x8x128xf32>
    %233 = arith.index_cast %228 : i32 to index
    %234 = memref.load %arg8[%233] : memref<32xf32, #tpu.memory_space<smem>>
    %235 = vector.broadcast %234 : f32 to vector<1x1x8x128xf32>
    %236 = arith.mulf %235, %45 : vector<1x1x8x128xf32>
    %237 = arith.addf %232, %236 : vector<1x1x8x128xf32>
    %238 = arith.index_cast %228 : i32 to index
    %239 = memref.load %arg9[%238] : memref<32xf32, #tpu.memory_space<smem>>
    %240 = vector.broadcast %239 : f32 to vector<1x1x8x128xf32>
    %241 = arith.addf %237, %240 : vector<1x1x8x128xf32>
    %cst_55 = arith.constant 5.000000e-01 : f32
    %242 = vector.broadcast %cst_55 : f32 to vector<1x1x8x128xf32>
    %243 = arith.mulf %242, %241 : vector<1x1x8x128xf32>
    %cst_56 = arith.constant 4.471500e-02 : f32
    %244 = vector.broadcast %cst_56 : f32 to vector<1x1x8x128xf32>
    %245 = arith.mulf %244, %241 : vector<1x1x8x128xf32>
    %246 = arith.mulf %245, %241 : vector<1x1x8x128xf32>
    %247 = arith.mulf %246, %241 : vector<1x1x8x128xf32>
    %248 = arith.addf %241, %247 : vector<1x1x8x128xf32>
    %cst_57 = arith.constant 0.797884583 : f32
    %249 = vector.broadcast %cst_57 : f32 to vector<1x1x8x128xf32>
    %250 = arith.mulf %249, %248 : vector<1x1x8x128xf32>
    %251 = math.tanh %250 : vector<1x1x8x128xf32>
    %cst_58 = arith.constant 1.000000e+00 : f32
    %252 = vector.broadcast %cst_58 : f32 to vector<1x1x8x128xf32>
    %253 = arith.addf %252, %251 : vector<1x1x8x128xf32>
    %254 = arith.mulf %243, %253 : vector<1x1x8x128xf32>
    %255 = arith.index_cast %228 : i32 to index
    %256 = memref.load %arg10[%255] : memref<32xf32, #tpu.memory_space<smem>>
    %257 = arith.index_cast %228 : i32 to index
    %258 = memref.load %arg11[%257] : memref<32xf32, #tpu.memory_space<smem>>
    %259 = vector.broadcast %256 : f32 to vector<1x1x8x128xf32>
    %260 = vector.broadcast %258 : f32 to vector<1x1x8x128xf32>
    %261 = arith.select %19, %259, %260 : vector<1x1x8x128xi1>, vector<1x1x8x128xf32>
    %262 = arith.mulf %261, %254 : vector<1x1x8x128xf32>
    %263 = arith.addf %227, %262 : vector<1x1x8x128xf32>
    %c6_i32 = arith.constant 6 : i32
    %264 = arith.addi %46, %c6_i32 : i32
    %265 = arith.index_cast %264 : i32 to index
    %266 = memref.load %arg7[%265] : memref<32xf32, #tpu.memory_space<smem>>
    %267 = vector.broadcast %266 : f32 to vector<1x1x8x128xf32>
    %268 = arith.mulf %267, %43 : vector<1x1x8x128xf32>
    %269 = arith.index_cast %264 : i32 to index
    %270 = memref.load %arg8[%269] : memref<32xf32, #tpu.memory_space<smem>>
    %271 = vector.broadcast %270 : f32 to vector<1x1x8x128xf32>
    %272 = arith.mulf %271, %45 : vector<1x1x8x128xf32>
    %273 = arith.addf %268, %272 : vector<1x1x8x128xf32>
    %274 = arith.index_cast %264 : i32 to index
    %275 = memref.load %arg9[%274] : memref<32xf32, #tpu.memory_space<smem>>
    %276 = vector.broadcast %275 : f32 to vector<1x1x8x128xf32>
    %277 = arith.addf %273, %276 : vector<1x1x8x128xf32>
    %cst_59 = arith.constant 5.000000e-01 : f32
    %278 = vector.broadcast %cst_59 : f32 to vector<1x1x8x128xf32>
    %279 = arith.mulf %278, %277 : vector<1x1x8x128xf32>
    %cst_60 = arith.constant 4.471500e-02 : f32
    %280 = vector.broadcast %cst_60 : f32 to vector<1x1x8x128xf32>
    %281 = arith.mulf %280, %277 : vector<1x1x8x128xf32>
    %282 = arith.mulf %281, %277 : vector<1x1x8x128xf32>
    %283 = arith.mulf %282, %277 : vector<1x1x8x128xf32>
    %284 = arith.addf %277, %283 : vector<1x1x8x128xf32>
    %cst_61 = arith.constant 0.797884583 : f32
    %285 = vector.broadcast %cst_61 : f32 to vector<1x1x8x128xf32>
    %286 = arith.mulf %285, %284 : vector<1x1x8x128xf32>
    %287 = math.tanh %286 : vector<1x1x8x128xf32>
    %cst_62 = arith.constant 1.000000e+00 : f32
    %288 = vector.broadcast %cst_62 : f32 to vector<1x1x8x128xf32>
    %289 = arith.addf %288, %287 : vector<1x1x8x128xf32>
    %290 = arith.mulf %279, %289 : vector<1x1x8x128xf32>
    %291 = arith.index_cast %264 : i32 to index
    %292 = memref.load %arg10[%291] : memref<32xf32, #tpu.memory_space<smem>>
    %293 = arith.index_cast %264 : i32 to index
    %294 = memref.load %arg11[%293] : memref<32xf32, #tpu.memory_space<smem>>
    %295 = vector.broadcast %292 : f32 to vector<1x1x8x128xf32>
    %296 = vector.broadcast %294 : f32 to vector<1x1x8x128xf32>
    %297 = arith.select %19, %295, %296 : vector<1x1x8x128xi1>, vector<1x1x8x128xf32>
    %298 = arith.mulf %297, %290 : vector<1x1x8x128xf32>
    %299 = arith.addf %263, %298 : vector<1x1x8x128xf32>
    %c7_i32 = arith.constant 7 : i32
    %300 = arith.addi %46, %c7_i32 : i32
    %301 = arith.index_cast %300 : i32 to index
    %302 = memref.load %arg7[%301] : memref<32xf32, #tpu.memory_space<smem>>
    %303 = vector.broadcast %302 : f32 to vector<1x1x8x128xf32>
    %304 = arith.mulf %303, %43 : vector<1x1x8x128xf32>
    %305 = arith.index_cast %300 : i32 to index
    %306 = memref.load %arg8[%305] : memref<32xf32, #tpu.memory_space<smem>>
    %307 = vector.broadcast %306 : f32 to vector<1x1x8x128xf32>
    %308 = arith.mulf %307, %45 : vector<1x1x8x128xf32>
    %309 = arith.addf %304, %308 : vector<1x1x8x128xf32>
    %310 = arith.index_cast %300 : i32 to index
    %311 = memref.load %arg9[%310] : memref<32xf32, #tpu.memory_space<smem>>
    %312 = vector.broadcast %311 : f32 to vector<1x1x8x128xf32>
    %313 = arith.addf %309, %312 : vector<1x1x8x128xf32>
    %cst_63 = arith.constant 5.000000e-01 : f32
    %314 = vector.broadcast %cst_63 : f32 to vector<1x1x8x128xf32>
    %315 = arith.mulf %314, %313 : vector<1x1x8x128xf32>
    %cst_64 = arith.constant 4.471500e-02 : f32
    %316 = vector.broadcast %cst_64 : f32 to vector<1x1x8x128xf32>
    %317 = arith.mulf %316, %313 : vector<1x1x8x128xf32>
    %318 = arith.mulf %317, %313 : vector<1x1x8x128xf32>
    %319 = arith.mulf %318, %313 : vector<1x1x8x128xf32>
    %320 = arith.addf %313, %319 : vector<1x1x8x128xf32>
    %cst_65 = arith.constant 0.797884583 : f32
    %321 = vector.broadcast %cst_65 : f32 to vector<1x1x8x128xf32>
    %322 = arith.mulf %321, %320 : vector<1x1x8x128xf32>
    %323 = math.tanh %322 : vector<1x1x8x128xf32>
    %cst_66 = arith.constant 1.000000e+00 : f32
    %324 = vector.broadcast %cst_66 : f32 to vector<1x1x8x128xf32>
    %325 = arith.addf %324, %323 : vector<1x1x8x128xf32>
    %326 = arith.mulf %315, %325 : vector<1x1x8x128xf32>
    %327 = arith.index_cast %300 : i32 to index
    %328 = memref.load %arg10[%327] : memref<32xf32, #tpu.memory_space<smem>>
    %329 = arith.index_cast %300 : i32 to index
    %330 = memref.load %arg11[%329] : memref<32xf32, #tpu.memory_space<smem>>
    %331 = vector.broadcast %328 : f32 to vector<1x1x8x128xf32>
    %332 = vector.broadcast %330 : f32 to vector<1x1x8x128xf32>
    %333 = arith.select %19, %331, %332 : vector<1x1x8x128xi1>, vector<1x1x8x128xf32>
    %334 = arith.mulf %333, %326 : vector<1x1x8x128xf32>
    %335 = arith.addf %299, %334 : vector<1x1x8x128xf32>
    %c8_i32_67 = arith.constant 8 : i32
    %c0_68 = arith.constant 0 : index
    %c0_69 = arith.constant 0 : index
    %c0_70 = arith.constant 0 : index
    %c0_71 = arith.constant 0 : index
    %336 = vector.load %arg14[%c0_68, %c0_69, %c0_70, %c0_71] : memref<1x1x8x128xf32, #tpu.memory_space<vmem>>, vector<1x1x8x128xf32>
    %337 = arith.addf %336, %335 : vector<1x1x8x128xf32>
    %c0_72 = arith.constant 0 : index
    %c0_73 = arith.constant 0 : index
    %c0_74 = arith.constant 0 : index
    %c0_75 = arith.constant 0 : index
    %338 = vector.load %arg14[%c0_72, %c0_73, %c0_74, %c0_75] : memref<1x1x8x128xf32, #tpu.memory_space<vmem>>, vector<1x1x8x128xf32>
    tpu.vector_store %arg14[%c0_72, %c0_73, %c0_74, %c0_75], %337 {strides = array<i32>} : memref<1x1x8x128xf32, #tpu.memory_space<vmem>>, vector<1x1x8x128xf32>,
    %c3_i32_76 = arith.constant 3 : i32
    %339 = arith.cmpi eq, %arg1, %c3_i32_76 : i32
    %340 = arith.extui %339 : i1 to i32
    %c0_i32_77 = arith.constant 0 : i32
    %341 = arith.cmpi ne, %340, %c0_i32_77 : i32
    scf.if %341 {
      %c0_78 = arith.constant 0 : index
      %c0_79 = arith.constant 0 : index
      %c0_80 = arith.constant 0 : index
      %c0_81 = arith.constant 0 : index
      %342 = vector.load %arg5[%c0_78, %c0_79, %c0_80, %c0_81] : memref<1x1x8x128xf32, #tpu.memory_space<vmem>>, vector<1x1x8x128xf32>
      %c0_82 = arith.constant 0 : index
      %c0_83 = arith.constant 0 : index
      %c0_84 = arith.constant 0 : index
      %c0_85 = arith.constant 0 : index
      %343 = vector.load %arg13[%c0_82, %c0_83, %c0_84, %c0_85] : memref<1x1x8x128xf32, #tpu.memory_space<vmem>>, vector<1x1x8x128xf32>
      %344 = arith.mulf %342, %343 : vector<1x1x8x128xf32>
      %cst_86 = arith.constant 2.000000e+00 : f32
      %345 = vector.broadcast %cst_86 : f32 to vector<1x1x8x128xf32>
      %346 = arith.mulf %345, %344 : vector<1x1x8x128xf32>
      %c0_87 = arith.constant 0 : index
      %347 = memref.load %arg6[%c0_87] : memref<1xf32, #tpu.memory_space<smem>>
      %c0_88 = arith.constant 0 : index
      %c0_89 = arith.constant 0 : index
      %c0_90 = arith.constant 0 : index
      %c0_91 = arith.constant 0 : index
      %348 = vector.load %arg14[%c0_88, %c0_89, %c0_90, %c0_91] : memref<1x1x8x128xf32, #tpu.memory_space<vmem>>, vector<1x1x8x128xf32>
      %cst_92 = arith.constant 1.000000e-01 : f32
      %349 = vector.broadcast %cst_92 : f32 to vector<1x1x8x128xf32>
      %350 = arith.mulf %349, %348 : vector<1x1x8x128xf32>
      %351 = arith.addf %346, %350 : vector<1x1x8x128xf32>
      %352 = vector.broadcast %347 : f32 to vector<1x1x8x128xf32>
      %353 = arith.mulf %352, %351 : vector<1x1x8x128xf32>
      %354 = arith.subf %0, %353 : vector<1x1x8x128xf32>
      %c0_93 = arith.constant 0 : index
      %c0_94 = arith.constant 0 : index
      %c0_95 = arith.constant 0 : index
      %c0_96 = arith.constant 0 : index
      %355 = vector.load %arg13[%c0_93, %c0_94, %c0_95, %c0_96] : memref<1x1x8x128xf32, #tpu.memory_space<vmem>>, vector<1x1x8x128xf32>
      tpu.vector_store %arg13[%c0_93, %c0_94, %c0_95, %c0_96], %354 {strides = array<i32>} : memref<1x1x8x128xf32, #tpu.memory_space<vmem>>, vector<1x1x8x128xf32>,
    } else {
    }
    return
  }
  func.func @transform_0(%arg0: i32, %arg1: i32) -> (i32, i32, i32, i32) {
    %c0_i32 = arith.constant 0 : i32
    %c0_i32_0 = arith.constant 0 : i32
    %c0_i32_1 = arith.constant 0 : i32
    return %c0_i32, %arg1, %arg0, %c0_i32_0 : i32, i32, i32, i32
  }
  func.func @transform_1(%arg0: i32, %arg1: i32) -> (i32, i32, i32, i32) {
    %c0_i32 = arith.constant 0 : i32
    %c0_i32_0 = arith.constant 0 : i32
    %c0_i32_1 = arith.constant 0 : i32
    return %c0_i32, %arg1, %arg0, %c0_i32_0 : i32, i32, i32, i32
  }
  func.func @transform_2(%arg0: i32, %arg1: i32) -> (i32, i32, i32, i32) {
    %c0_i32 = arith.constant 0 : i32
    %c0_i32_0 = arith.constant 0 : i32
    %c0_i32_1 = arith.constant 0 : i32
    %c0_i32_2 = arith.constant 0 : i32
    return %c0_i32, %c0_i32_0, %arg0, %c0_i32_1 : i32, i32, i32, i32
  }
  func.func @transform_3(%arg0: i32, %arg1: i32) -> (i32, i32, i32, i32) {
    %c0_i32 = arith.constant 0 : i32
    %c0_i32_0 = arith.constant 0 : i32
    %c0_i32_1 = arith.constant 0 : i32
    %c0_i32_2 = arith.constant 0 : i32
    return %c0_i32, %c0_i32_0, %arg0, %c0_i32_1 : i32, i32, i32, i32
  }
  func.func @transform_4(%arg0: i32, %arg1: i32) -> i32 {
    %c0_i32 = arith.constant 0 : i32
    %c0_i32_0 = arith.constant 0 : i32
    return %c0_i32 : i32
  }
  func.func @transform_5(%arg0: i32, %arg1: i32) -> i32 {
    %c0_i32 = arith.constant 0 : i32
    %c0_i32_0 = arith.constant 0 : i32
    return %c0_i32 : i32
  }
  func.func @transform_6(%arg0: i32, %arg1: i32) -> i32 {
    %c0_i32 = arith.constant 0 : i32
    %c0_i32_0 = arith.constant 0 : i32
    return %c0_i32 : i32
  }
  func.func @transform_7(%arg0: i32, %arg1: i32) -> i32 {
    %c0_i32 = arith.constant 0 : i32
    %c0_i32_0 = arith.constant 0 : i32
    return %c0_i32 : i32
  }
  func.func @transform_8(%arg0: i32, %arg1: i32) -> i32 {
    %c0_i32 = arith.constant 0 : i32
    %c0_i32_0 = arith.constant 0 : i32
    return %c0_i32 : i32
  }
  func.func @transform_9(%arg0: i32, %arg1: i32) -> i32 {
    %c0_i32 = arith.constant 0 : i32
    %c0_i32_0 = arith.constant 0 : i32
    return %c0_i32 : i32
  }
  func.func @transform_10(%arg0: i32, %arg1: i32) -> i32 {
    %c0_i32 = arith.constant 0 : i32
    %c0_i32_0 = arith.constant 0 : i32
    return %c0_i32 : i32
  }
  func.func @transform_11(%arg0: i32, %arg1: i32) -> (i32, i32, i32, i32) {
    %c0_i32 = arith.constant 0 : i32
    %c0_i32_0 = arith.constant 0 : i32
    %c0_i32_1 = arith.constant 0 : i32
    %c0_i32_2 = arith.constant 0 : i32
    return %c0_i32, %c0_i32_0, %arg0, %c0_i32_1 : i32, i32, i32, i32
  }
}

</mosaic_0001>

<bundles_post_ra>
// kernel: irb_forward.3
= control target key start
LH: loop header
LB: loop body
LE: loop exit
PB: predicated region body
PF: predicated region fallthrough
CT: control target
= control target key end

     0   :  { %s457_s12 = smov 0   ;;  %s459_s13 = smov 0   ;;  %s496_s0 = inlined_call_operand.vmem [shape: f32[1,1,8,128], index: 0, kind: input, shape index: {}]   ;;  %s497_s1 = inlined_call_operand.vmem [shape: f32[1,4,8,128], index: 1, kind: input, shape index: {}]   ;;  %s498_s2 = inlined_call_operand.vmem [shape: f32[1,1,8,128], index: 2, kind: input, shape index: {}]   ;;  %s499_s3 = inlined_call_operand.vmem [shape: f32[1,4,8,128], index: 3, kind: output, shape index: {}]  }
   0x1   :  { %s461_s14 = smov 0  }
   0x2 LB: > { %s22_s15 = sadd.s32 1, %s428_s13  ;;  %p378_p0 = scmp.ge.s32.totalorder %s432_s14, 1  ;;  %s432_s14 = sphi %s461_s14, %s13_s14   ;;  %s428_s13 = sphi %s459_s13, %s501_s13   ;;  %s424_s12 = sphi %s457_s12, %s500_s12  }
   0x3   : > { %p23_p1 = scmp.ge.s32.totalorder %s22_s15, 4  ;;  %p173_p2 = scmp.lt.s32.totalorder %s432_s14, 5 }
   0x5   : > { %s503_s15 = smov (%p23_p1, %s22_s15), 0  ;;  %p174_p3 = pnand %p378_p0, %p173_p2 }
   0x6   : > { %s434_s18 = smov (!%p174_p3), 127   ;;  %p213_p4 = scmp.lt.s32.totalorder (!%p174_p3), %s424_s12, 3 }
   0x7   : > { %177 = sbr.rel (%p174_p3) target bundleno = 143 (0x8f), region = 32  ;;  %s435_s19 = smov (!%p174_p3), 1  }
   0xc   : > { %v231_v0 = vld [vmem:[%s496_s0] sm:$0xff]  ;;  %s505_s12 = smov (!%p213_p4, %s424_s12), 3  ;;  %v233_v2 = vlaneseq  ;;  %v436_v8 = vmov 1.0  }
   0xd   : > { %254 = vrot.lane.b32.xlu0 %v231_v0, %s434_s18  ;;  %s379_s20 = sshll.u32 %s505_s12, 3  ;;  %v249_v17 = vld [vmem:[%s498_s2] sm:$0xff] }
   0xe   : > { %s219_s23 = scalar_lea.vmem %s497_s1, %s379_s20  ;;  %v234_v3 = vand.u32 127, %v233_v2  ;;  %s230_s28 = scalar_lea.vmem %s499_s3, %s379_s20 }
   0xf   : > { %v232_v1 = vld [vmem:[%s219_s23] sm:$0xff] }
  0x10   : > { %250 = vrot.lane.b32.xlu1 %v232_v1, %s435_s19  ;;  %v239_v5 = vand.u32 1, %v234_v3 }
  0x11   : > { %256 = vrot.lane.b32.xlu0 %v231_v0, %s435_s19 }
  0x12   : > { %vm247_vm0 = vcmp.eq.s32.totalorder %v239_v5, 0 }
  0x13   : > { %v248_v9 = vsel %vm247_vm0, -1.0, %v436_v8 }
  0x14   : > { %260 = vrot.lane.b32.xlu1 %v232_v1, %s434_s18 }
  0x7f   : > { %v255_v4 = vpop.permute.xlu0 %254 }
  0x82   : > { %v251_v7 = vpop.permute.xlu1 %250 }
  0x83   : > { %v257_v6 = vpop.permute.xlu0 %256  ;;  %v252_v11 = vsel %vm247_vm0, %v232_v1, %v251_v7 }
  0x84   : > { %v258_v10 = vsel %vm247_vm0, %v255_v4, %v257_v6  ;;  %v253_v15 = vmul.f32 %v252_v11, %v231_v0 }
  0x85   : > { %v259_v12 = vmul.f32 %v258_v10, %v248_v9 }
  0x86   : > { %v261_v13 = vpop.permute.xlu1 %260 }
  0x87   : > { %v262_v14 = vsel %vm247_vm0, %v261_v13, %v232_v1 }
  0x88   : > { %v263_v16 = vmul.f32 %v262_v14, %v259_v12 }
  0x8a   : > { %v264_v18 = vadd.f32 %v263_v16, %v253_v15 }
  0x8c   : > { %v265_v19 = vmul.f32 %v264_v18, %v249_v17 }
  0x8e   : > { %266 = vst [vmem:[%s230_s28] sm:$0xff] %v265_v19 }
  0x8f PF: > { %s13_s14 = sadd.s32 1, %s432_s14   ;;  %s500_s12 = smov %s428_s13 }
  0x90   : > { %p10_p5 = scmp.ge.s32.totalorder %s13_s14, 6   ;;  %s501_s13 = smov %s503_s15 }
  0x92   :  { %12 = sbr.rel (!%p10_p5) target bundleno = 2 (0x2), region = 68 }

// kernel: irb_forward.4
= control target key start
LH: loop header
LB: loop body
LE: loop exit
PB: predicated region body
PF: predicated region fallthrough
CT: control target
= control target key end

     0   :  { %s500_s15 = smov 0   ;;  %s502_s16 = smov 0   ;;  %s530_s0 = inlined_call_operand.vmem [shape: f32[1,4,8,128], index: 0, kind: input, shape index: {}]   ;;  %s531_s1 = inlined_call_operand.vmem [shape: f32[1,4,8,128], index: 1, kind: input, shape index: {}]   ;;  %s532_s2 = inlined_call_operand.vmem [shape: f32[1,1,8,128], index: 2, kind: input, shape index: {}]   ;;  %s533_s3 = inlined_call_operand.vmem [shape: f32[1,1,8,128], index: 3, kind: input, shape index: {}]   ;;  %s534_s4 = inlined_call_operand.vmem [shape: f32[1,4,8,128], index: 4, kind: output, shape index: {}]  }
   0x1   :  { %s504_s17 = smov 0  }
   0x2 LB: > { %s23_s18 = sadd.s32 1, %s469_s16  ;;  %p421_p0 = scmp.ge.s32.totalorder %s473_s17, 1  ;;  %s473_s17 = sphi %s504_s17, %s14_s17   ;;  %s469_s16 = sphi %s502_s16, %s536_s16   ;;  %s465_s15 = sphi %s500_s15, %s535_s15  }
   0x3   : > { %p24_p1 = scmp.ge.s32.totalorder %s23_s18, 4  ;;  %p212_p2 = scmp.lt.s32.totalorder %s473_s17, 5 }
   0x5   : > { %s538_s18 = smov (%p24_p1, %s23_s18), 0  ;;  %p213_p3 = pnand %p421_p0, %p212_p2 }
   0x6   : > { %p257_p4 = scmp.lt.s32.totalorder (!%p213_p3), %s465_s15, 3 }
   0x7   : > { %216 = sbr.rel (%p213_p3) target bundleno = 24 (0x18), region = 36 }
   0xc   : > { %s540_s15 = smov (!%p257_p4, %s465_s15), 3  ;;  %v286_v0 = vld [vmem:[%s532_s2] sm:$0xff] }
   0xd   : > { %s422_s19 = sshll.u32 %s540_s15, 3  ;;  %v289_v1 = vld [vmem:[%s533_s3] sm:$0xff] }
   0xe   : > { %s263_s26 = scalar_lea.vmem %s530_s0, %s422_s19  ;;  %s270_s29 = scalar_lea.vmem %s531_s1, %s422_s19 }
   0xf   : > { %v287_v2 = vld [vmem:[%s263_s26] sm:$0xff]  ;;  %s285_s6 = scalar_lea.vmem %s534_s4, %s422_s19 }
  0x10   : > { %v290_v3 = vld [vmem:[%s270_s29] sm:$0xff]  ;;  %v288_v4 = vmul.f32 %v287_v2, %v286_v0 }
  0x11   : > { %v291_v5 = vmul.f32 %v290_v3, %v289_v1 }
  0x13   : > { %v292_v6 = vsub.f32 %v288_v4, %v291_v5 }
  0x15   : > { %v293_v7 = vmul.f32 %v292_v6, %v286_v0 }
  0x17   : > { %294 = vst [vmem:[%s285_s6] sm:$0xff] %v293_v7 }
  0x18 PF: > { %s14_s17 = sadd.s32 1, %s473_s17   ;;  %s535_s15 = smov %s469_s16 }
  0x19   : > { %p11_p5 = scmp.ge.s32.totalorder %s14_s17, 6   ;;  %s536_s16 = smov %s538_s18 }
  0x1b   :  { %13 = sbr.rel (!%p11_p5) target bundleno = 2 (0x2), region = 75 }

// kernel: irb_forward.5
= control target key start
LH: loop header
LB: loop body
LE: loop exit
PB: predicated region body
PF: predicated region fallthrough
CT: control target
= control target key end

     0   :  { %s1780_s0 = inlined_call_operand.vmem [shape: f32[1,4,8,128], index: 0, kind: input, shape index: {}]   ;;  %s1781_s1 = inlined_call_operand.vmem [shape: f32[1,4,8,128], index: 1, kind: input, shape index: {}]   ;;  %s1782_s2 = inlined_call_operand.vmem [shape: f32[1,1,8,128], index: 2, kind: input, shape index: {}]   ;;  %s1783_s3 = inlined_call_operand.vmem [shape: f32[1,1,8,128], index: 3, kind: input, shape index: {}]   ;;  %s1784_s4 = inlined_call_operand.<no memory space> [shape: f32[1], index: 4, kind: input, shape index: {}]   ;;  %s1785_s5 = inlined_call_operand.vmem [shape: f32[32], index: 5, kind: input, shape index: {}]   ;;  %s1786_s6 = inlined_call_operand.vmem [shape: f32[32], index: 6, kind: input, shape index: {}]   ;;  %s1787_s7 = inlined_call_operand.vmem [shape: f32[32], index: 7, kind: input, shape index: {}]   ;;  %s1788_s8 = inlined_call_operand.vmem [shape: f32[32], index: 8, kind: input, shape index: {}]   ;;  %s1789_s9 = inlined_call_operand.vmem [shape: f32[32], index: 9, kind: input, shape index: {}]   ;;  %s1790_s10 = inlined_call_operand.vmem [shape: f32[2], index: 10, kind: input, shape index: {}]   ;;  %s1791_s11 = inlined_call_operand.vmem [shape: f32[1,1,8,128], index: 11, kind: output, shape index: {}]  }
   0x1   :  { %1800 = sst [smem:[#allocation22_spill]] %s1780_s0 }
   0x2   :  { %1801 = sst [smem:[#allocation23_spill]] %s1781_s1 }
   0x3   :  { %1802 = sst [smem:[#allocation24_spill]] %s1782_s2 }
   0x4   :  { %1803 = sst [smem:[#allocation25_spill]] %s1783_s3 }
   0x5   :  { %1804 = sst [smem:[#allocation26_spill]] %s1785_s5 }
   0x6   :  { %1805 = sst [smem:[#allocation27_spill]] %s1786_s6 }
   0x7   :  { %1806 = sst [smem:[#allocation28_spill]] %s1787_s7 }
   0x8   :  { %1807 = sst [smem:[#allocation29_spill]] %s1788_s8 }
   0x9   :  { %1808 = sst [smem:[#allocation30_spill]] %s1789_s9 }
   0xa   :  { %1809 = sst [smem:[#allocation31_spill]] %s1790_s10 }
   0xb   :  { %1810 = sst [smem:[#allocation32_spill]] %s1791_s11 }
   0xc   :  { %16 = sst [smem:[#allocation3]] %s1784_s4 }
   0xd   :  { %17 = vsyncpa [#allocation5], 0 }
   0xe   :  { %18 = vsyncpa [#allocation7], 0 }
   0xf   :  { %19 = vsyncpa [#allocation10], 0 }
  0x10   :  { %20 = vsyncpa [#allocation13], 0  ;;  %s1336_s19 = smov 0   ;;  %s1338_s20 = smov 0  }
  0x11   :  { %s1340_s21 = smov 0  }
  0x12 LB: > { %1811 = sst [smem:[#allocation18_spill]] %s1253_s19  ;;  %s1001_s24 = sadd.s32 4294967295, %s1261_s21   ;;  %s1261_s21 = sphi %s1340_s21, %s26_s21   ;;  %s1257_s20 = sphi %s1338_s20, %s1841_s20   ;;  %s1253_s19 = sphi %s1336_s19, %s1840_s19  }
  0x13   : > { %1812 = sst [smem:[#allocation19_spill]] %s1257_s20  ;;  %p1002_p0 = scmp.ge.s32.totalorder %s1261_s21, 1 }
  0x14   : > { %1813 = sst [smem:[#allocation20_spill]] %s1261_s21  ;;  %p324_p1 = scmp.lt.s32.totalorder %s1261_s21, 5 }
  0x15   : > { %s1814_s6 = sld [smem:[#allocation27_spill]]  ;;  %p1357_p2 = scmp.eq.s32.totalorder %s1001_s24, 0 }
  0x16   : > { %p1361_p3 = pnand %p1002_p0, %p324_p1  ;;  %s1817_s8 = sld [smem:[#allocation29_spill]] }
  0x17   : > { %s1815_s25 = scalar_select %p1357_p2, 1, 0 }
  0x18   : > { %s1816_s26 = scalar_select %p1361_p3, 1, 0 }
  0x19   : > { %p1052_p4 = pneg %p1361_p3  ;;  %s35_s12 = sadd.s32 1, %s1257_s20 }
  0x1a   : > { %s1819_s5 = sld [smem:[#allocation26_spill]]  ;;  %p1380_p6 = scmp.ge.s32.totalorder %s35_s12, 4 }
  0x1b   : > { %s365_s23 = sshll.u32 %s1814_s6, 4  ;;  %p1372_p5 = pnand %p1357_p2, %p1052_p4  ;;  %s366_s23 = int_to_ptr.vmem [resolvable:$true] %s365_s23 }
  0x1c   : > { %s387_s29 = sshll.u32 %s1817_s8, 4  ;;  %s1133_s17 = scalar_lea.vmem %s366_s23, 16  ;;  %s388_s29 = int_to_ptr.vmem [resolvable:$true] %s387_s29 }
  0x1d   : > { %s1820_s16 = scalar_select %p1380_p6, 1, 0 }
  0x1e   : > { %p1134_p7 = scmp.ne.s32.totalorder %s366_s23, %s1133_s17  ;;  %p1386_p8 = pneg %p1372_p5 }
  0x1f   : > { %p1141_p11 = scmp.lt.s32.totalorder %s366_s23, %s366_s23  ;;  %p1142_p12 = scmp.lt.s32.totalorder %s1133_s17, %s1133_s17 }
  0x20   : > { %s354_s15 = sshll.u32 %s1819_s5, 4  ;;  %p1136_p9 = pnand %p1386_p8, %p1134_p7  ;;  %s355_s15 = int_to_ptr.vmem [resolvable:$true] %s354_s15 }
  0x21   : > { %p1143_p13 = por %p1142_p12, %p1141_p11 }
  0x22   : > { %p1137_p10 = pneg %p1136_p9 }
  0x24   : > { %p1144_p0 = pnand %p1143_p13, %p1137_p10 }
  0x26   : > { %1147 = shalt.err (!%p1144_p0)
}
  0x27   : > { %s1263_s4 = smov [#allocation6]   ;;  %s1148_s22 = scalar_lea.vmem %s388_s29, 16 }
  0x28   : > { %1058 = dma.vmem_to_smem (!%p1372_p5), %s366_s23, 16, %s1263_s4, [#allocation7]  }
  0x29   : > { %p1149_p1 = scmp.ne.s32.totalorder %s388_s29, %s1148_s22  ;;  %p1156_p3 = scmp.lt.s32.totalorder %s388_s29, %s388_s29 }
  0x2a   : > { %p1157_p6 = scmp.lt.s32.totalorder %s1148_s22, %s1148_s22 }
  0x2b   : > { %p1151_p4 = pnand %p1149_p1, %p1386_p8 }
  0x2c   : > { %p1158_p7 = por %p1157_p6, %p1156_p3 }
  0x2d   : > { %p1152_p2 = pneg %p1151_p4 }
  0x2f   : > { %p1159_p9 = pnand %p1158_p7, %p1152_p2 }
  0x31   : > { %1162 = shalt.err (!%p1159_p9)
}
  0x32   : > { %s1264_s24 = smov [#allocation9]   ;;  %p1822_p10 = scmp.ne.s32.totalorder %s1820_s16, 0 }
  0x33   : > { %1064 = dma.vmem_to_smem (!%p1372_p5), %s388_s29, 16, %s1264_s24, [#allocation10]  }
  0x34   : > { %s1843_s12 = smov (%p1822_p10, %s35_s12), 0  ;;  %s1163_s23 = scalar_lea.vmem %s355_s15, 16 }
  0x35   : > { %1823 = sst [smem:[#allocation21_spill]] %s1843_s12  ;;  %p1164_p11 = scmp.ne.s32.totalorder %s355_s15, %s1163_s23 }
  0x36   : > { %p1171_p0 = scmp.lt.s32.totalorder %s355_s15, %s355_s15  ;;  %p1172_p1 = scmp.lt.s32.totalorder %s1163_s23, %s1163_s23 }
  0x37   : > { %p1166_p12 = pnand %p1164_p11, %p1386_p8 }
  0x38   : > { %p1173_p3 = por %p1172_p1, %p1171_p0 }
  0x39   : > { %p1167_p13 = pneg %p1166_p12 }
  0x3b   : > { %p1174_p2 = pnand %p1173_p3, %p1167_p13 }
  0x3d   : > { %1177 = shalt.err (!%p1174_p2)
}
  0x3e   : > { %s1265_s27 = smov [#allocation4]   ;;  %s1824_s7 = sld [smem:[#allocation28_spill]] }
  0x3f   : > { %1055 = dma.vmem_to_smem (!%p1372_p5), %s355_s15, 16, %s1265_s27, [#allocation5]  }
  0x40   : > { %s1825_s9 = sld [smem:[#allocation30_spill]] }
  0x44   : > { %s376_s13 = sshll.u32 %s1824_s7, 4  ;;  %s377_s13 = int_to_ptr.vmem [resolvable:$true] %s376_s13 }
  0x45   : > { %s1178_s4 = scalar_lea.vmem %s377_s13, 16  ;;  %p1186_p9 = scmp.lt.s32.totalorder %s377_s13, %s377_s13 }
  0x46   : > { %s398_s17 = sshll.u32 %s1825_s9, 4  ;;  %p1179_p6 = scmp.ne.s32.totalorder %s377_s13, %s1178_s4  ;;  %s399_s17 = int_to_ptr.vmem [resolvable:$true] %s398_s17 }
  0x47   : > { %p1187_p10 = scmp.lt.s32.totalorder %s1178_s4, %s1178_s4 }
  0x48   : > { %p1181_p4 = pnand %p1179_p6, %p1386_p8 }
  0x49   : > { %p1188_p11 = por %p1187_p10, %p1186_p9 }
  0x4a   : > { %p1182_p7 = pneg %p1181_p4 }
  0x4c   : > { %p1189_p12 = pnand %p1188_p11, %p1182_p7 }
  0x4e   : > { %1192 = shalt.err (!%p1189_p12)
}
  0x4f   : > { %s1266_s15 = smov [#allocation8]   ;;  %s1193_s22 = scalar_lea.vmem %s399_s17, 16 }
  0x50   : > { %1061 = dma.vmem_to_smem (!%p1372_p5), %s377_s13, 16, %s1266_s15, [#allocation7]  }
  0x51   : > { %p1194_p13 = scmp.ne.s32.totalorder %s399_s17, %s1193_s22  ;;  %p1201_p3 = scmp.lt.s32.totalorder %s399_s17, %s399_s17 }
  0x52   : > { %p1202_p2 = scmp.lt.s32.totalorder %s1193_s22, %s1193_s22 }
  0x53   : > { %p1196_p0 = pnand %p1194_p13, %p1386_p8 }
  0x54   : > { %p1203_p6 = por %p1202_p2, %p1201_p3 }
  0x55   : > { %p1197_p1 = pneg %p1196_p0 }
  0x57   : > { %p1204_p4 = pnand %p1203_p6, %p1197_p1 }
  0x59   : > { %1207 = shalt.err (!%p1204_p4)
}
  0x5a   : > { %s1267_s24 = smov [#allocation11]   ;;  %s1826_s10 = sld [smem:[#allocation31_spill]] }
  0x5b   : > { %1067 = dma.vmem_to_smem (!%p1372_p5), %s399_s17, 16, %s1267_s24, [#allocation10]  }
  0x60   : > { %s409_s28 = sshll.u32 %s1826_s10, 4  ;;  %s410_s28 = int_to_ptr.vmem [resolvable:$true] %s409_s28 }
  0x61   : > { %s1208_s29 = scalar_lea.vmem %s410_s28, 16  ;;  %p1216_p11 = scmp.lt.s32.totalorder %s410_s28, %s410_s28 }
  0x62   : > { %p1209_p7 = scmp.ne.s32.totalorder %s410_s28, %s1208_s29  ;;  %p1217_p12 = scmp.lt.s32.totalorder %s1208_s29, %s1208_s29 }
  0x64   : > { %p1211_p9 = pnand %p1209_p7, %p1386_p8  ;;  %p1218_p13 = por %p1217_p12, %p1216_p11 }
  0x66   : > { %p1212_p10 = pneg %p1211_p9 }
  0x68   : > { %p1219_p0 = pnand %p1218_p13, %p1212_p10 }
  0x6a   : > { %1222 = shalt.err (!%p1219_p0)
}
  0x6b   : > { %s1268_s13 = smov [#allocation12]   ;;  %p1827_p1 = scmp.ne.s32.totalorder %s1816_s26, 0 }
  0x6c   : > { %1070 = dma.vmem_to_smem (!%p1372_p5), %s410_s28, 16, %s1268_s13, [#allocation13]  }
  0x6d   : > { %442 = sbr.rel (%p1827_p1) target bundleno = 329 (0x149), region = 64  ;;  %p1828_p3 = scmp.ne.s32.totalorder (!%p1827_p1), %s1815_s25, 0 }
  0x72   : > { %1236 = dma.done.wait (%p1828_p3), [#allocation5], 16  }
  0x73   : > { %1238 = vsyncadd (%p1828_p3), [#allocation5], 4294967280 }
  0x74   : > { %1240 = dma.done.wait (%p1828_p3), [#allocation7], 32  }
  0x75   : > { %1242 = vsyncadd (%p1828_p3), [#allocation7], 4294967264 }
  0x76   : > { %1244 = dma.done.wait (%p1828_p3), [#allocation10], 32  }
  0x77   : > { %1246 = vsyncadd (%p1828_p3), [#allocation10], 4294967264 }
  0x78   : > { %1248 = dma.done.wait (%p1828_p3), [#allocation13], 16  }
  0x79   : > { %1250 = vsyncadd (%p1828_p3), [#allocation13], 4294967280 }
  0x7a   : > { %468 = sfence }
  0x7b   : > { %p519_p5 = scmp.lt.s32.totalorder %s1253_s19, 3  ;;  %s1829_s2 = sld [smem:[#allocation24_spill]]  ;;  %v546_v1 = vlaneseq  ;;  %v1269_v5 = vmov 1.0  }
  0x7c   : > { %s1830_s0 = sld [smem:[#allocation22_spill]]  ;;  %p1021_p8 = scmp.ne.s32.totalorder %s1253_s19, 0 }
  0x7d   : > { %s520_s18 = scalar_select %p519_p5, %s1253_s19, 3  ;;  %v547_v2 = vand.u32 127, %v546_v1 }
  0x7e   : > { %s1831_s1 = sld [smem:[#allocation23_spill]] }
  0x7f   : > { %s1019_s14 = sshll.u32 %s520_s18, 3  ;;  %v552_v3 = vand.u32 1, %v547_v2  ;;  %s567_s24 = sld [smem:[#allocation12]] (!%p1021_p8) }
  0x80   : > { %565 = sbr.rel (%p1021_p8) target bundleno = 138 (0x8a), region = 92  ;;  %s1834_s11 = sld [smem:[#allocation32_spill]] (!%p1021_p8) }
  0x81   : > { %v1449_v0 = vld [vmem:[%s1829_s2] sm:$0xff]  ;;  %vm1458_vm0 = vcmp.eq.s32.totalorder %v552_v3, 0  ;;  %s1022_s28 = sld [smem:[#allocation12 + $0x1]] (!%p1021_p8) }
  0x82   : > { %s525_s4 = scalar_lea.vmem %s1830_s0, %s1019_s14  ;;  %v1464_v6 = vsel %vm1458_vm0, -1.0, %v1269_v5 }
  0x84   : > { %s532_s22 = scalar_lea.vmem %s1831_s1, %s1019_s14 }
  0x85   : > { %v1270_v7 = vmov 0.0   ;;  %v569_v8 = vstv %s567_s24 }
  0x86   : > { %566 = vst [vmem:[%s1834_s11] sm:$0xff] %v1270_v7 }
  0x87   : > { %v570_v9 = vstv %s1022_s28 }
  0x88   : > { %v571_v10 = vsel %vm1458_vm0, %v569_v8, %v570_v9 }
  0x89   : > { %572 = vst [vmem:[#allocation2] sm:$0xff] %v571_v10 }
  0x8a PF: > { %v1472_v11 = vld [vmem:[%s525_s4] sm:$0xff]  ;;  %s1271_s29 = smov 1   ;;  %s1272_s13 = smov 127  }
  0x8b   : > { %593 = vrot.lane.b32.xlu0 %v1449_v0, %s1271_s29  ;;  %580 = vrot.lane.b32.xlu1 %v1472_v11, %s1272_s13  ;;  %v1478_v12 = vld [vmem:[%s532_s22] sm:$0xff]  ;;  %s1483_s26 = sshll.u32 %s1253_s19, 3 }
  0x8c   : > { %s1486_s30 = sadd.s32 1, %s1483_s26  ;;  %s1489_s18 = sadd.s32 2, %s1483_s26 }
  0x8d   : > { %s1492_s14 = sld [smem:[#allocation4 + %s1483_s26]]  ;;  %s1495_s16 = sadd.s32 3, %s1483_s26 }
  0x8e   : > { %s1498_s17 = sld [smem:[#allocation4 + %s1486_s30]]  ;;  %s1501_s4 = sadd.s32 4, %s1483_s26 }
  0x8f   : > { %596 = vrot.lane.b32.xlu0 %v1449_v0, %s1272_s13  ;;  %582 = vrot.lane.b32.xlu1 %v1472_v11, %s1271_s29  ;;  %s1504_s25 = sld [smem:[#allocation4 + %s1489_s18]]  ;;  %s1507_s15 = sadd.s32 5, %s1483_s26 }
  0x90   : > { %s1510_s22 = sld [smem:[#allocation4 + %s1495_s16]]  ;;  %s1513_s24 = sadd.s32 6, %s1483_s26 }
  0x91   : > { %s1516_s23 = sld [smem:[#allocation4 + %s1501_s4]]  ;;  %s1519_s27 = sadd.s32 7, %s1483_s26 }
  0x92   : > { %s1522_s28 = sld [smem:[#allocation4 + %s1507_s15]] }
  0x93   : > { %576 = vrot.lane.b32.xlu0 %v1478_v12, %s1271_s29  ;;  %586 = vrot.lane.b32.xlu1 %v1478_v12, %s1272_s13  ;;  %s1525_s29 = sld [smem:[#allocation4 + %s1513_s24]]  ;;  %v601_v13 = vstv %s1492_s14 }
  0x94   : > { %s1528_s13 = sld [smem:[#allocation4 + %s1519_s27]]  ;;  %v628_v14 = vstv %s1498_s17 }
  0x95   : > { %s1531_s0 = sld [smem:[#allocation6 + %s1483_s26]]  ;;  %v655_v15 = vstv %s1504_s25 }
  0x96   : > { %s1534_s1 = sld [smem:[#allocation8 + %s1483_s26]]  ;;  %v682_v16 = vstv %s1510_s22 }
  0x97   : > { %s1537_s2 = sld [smem:[#allocation6 + %s1486_s30]]  ;;  %v709_v17 = vstv %s1516_s23 }
  0x98   : > { %s1540_s5 = sld [smem:[#allocation8 + %s1486_s30]]  ;;  %v736_v18 = vstv %s1522_s28 }
  0x99   : > { %s1543_s6 = sld [smem:[#allocation6 + %s1489_s18]]  ;;  %v763_v19 = vstv %s1525_s29 }
  0x9a   : > { %s1546_s7 = sld [smem:[#allocation8 + %s1489_s18]]  ;;  %v790_v20 = vstv %s1528_s13 }
  0x9b   : > { %s1549_s8 = sld [smem:[#allocation6 + %s1495_s16]]  ;;  %v604_v22 = vstv %s1531_s0 }
  0x9c   : > { %s1552_s9 = sld [smem:[#allocation8 + %s1495_s16]]  ;;  %v608_v23 = vstv %s1534_s1 }
  0x9d   : > { %s1555_s10 = sld [smem:[#allocation6 + %s1501_s4]]  ;;  %v631_v24 = vstv %s1537_s2 }
  0x9e   : > { %s1558_s12 = sld [smem:[#allocation8 + %s1501_s4]]  ;;  %v635_v25 = vstv %s1540_s5 }
  0x9f   : > { %s1561_s20 = sld [smem:[#allocation6 + %s1507_s15]]  ;;  %v658_v27 = vstv %s1543_s6 }
  0xa0   : > { %s1564_s21 = sld [smem:[#allocation8 + %s1507_s15]]  ;;  %v662_v28 = vstv %s1546_s7 }
  0xa1   : > { %s1567_s3 = sld [smem:[#allocation6 + %s1513_s24]]  ;;  %v685_v29 = vstv %s1549_s8 }
  0xa2   : > { %s1570_s19 = sld [smem:[#allocation8 + %s1513_s24]]  ;;  %v689_v30 = vstv %s1552_s9 }
  0xa3   : > { %s1573_s11 = sld [smem:[#allocation6 + %s1519_s27]]  ;;  %v712_v31 = vstv %s1555_s10 }
  0xa4   : > { %v716_v32 = vstv %s1558_s12  ;;  %s1602_s0 = sld [smem:[#allocation8 + %s1519_s27]] }
  0xa5   : > { %v739_v33 = vstv %s1561_s20  ;;  %s1653_s1 = sld [smem:[#allocation9 + %s1486_s30]] }
  0xa6   : > { %v743_v34 = vstv %s1564_s21  ;;  %s1658_s2 = sld [smem:[#allocation11 + %s1486_s30]] }
  0xa7   : > { %v766_v35 = vstv %s1567_s3  ;;  %s1663_s3 = sld [smem:[#allocation9 + %s1489_s18]] }
  0xa8   : > { %v770_v36 = vstv %s1570_s19  ;;  %s1670_s5 = sld [smem:[#allocation11 + %s1489_s18]] }
  0xa9   : > { %v793_v37 = vstv %s1573_s11  ;;  %s1678_s6 = sld [smem:[#allocation9 + %s1483_s26]] }
  0xaa   : > { %s1681_s7 = sld [smem:[#allocation11 + %s1483_s26]] }
  0xab   : > { %s1835_s10 = sld [smem:[#allocation32_spill]] }
  0xac   : > { %s1688_s11 = sld [smem:[#allocation9 + %s1495_s16]] }
  0xad   : > { %s1691_s19 = sld [smem:[#allocation11 + %s1495_s16]] }
  0xae   : > { %s1694_s20 = sld [smem:[#allocation9 + %s1501_s4]] }
  0xaf   : > { %s1700_s26 = sld [smem:[#allocation11 + %s1501_s4]] }
  0xb0   : > { %s1707_s30 = sld [smem:[#allocation9 + %s1507_s15]] }
  0xb1   : > { %s1710_s18 = sld [smem:[#allocation11 + %s1507_s15]] }
  0xb2   : > { %s1715_s14 = sld [smem:[#allocation9 + %s1513_s24]] }
  0xb3   : > { %s1722_s16 = sld [smem:[#allocation11 + %s1513_s24]] }
  0xb4   : > { %s1727_s17 = sld [smem:[#allocation9 + %s1519_s27]] }
  0xb5   : > { %s1734_s4 = sld [smem:[#allocation11 + %s1519_s27]] }
  0xb6   : > { %s1836_s25 = sld [smem:[#allocation18_spill]] }
  0xbc   : > { %p1024_p2 = scmp.ne.s32.totalorder %s1836_s25, 3 }
  0xbd   : > { %s1837_s24 = sld [smem:[#allocation25_spill]] (!%p1024_p2) }
  0xbe   : > { %s1838_s28 = sld [smem:[#allocation32_spill]] (!%p1024_p2) }
  0xbf   : > { %s826_s29 = sld [smem:[#allocation3]] (!%p1024_p2) }
  0xfd   : > { %v594_v21 = vpop.permute.xlu0 %593  ;;  %v581_v63 = vpop.permute.xlu1 %580 }
  0xfe   : > { %v595_v26 = vsel %vm1458_vm0, %v1449_v0, %v594_v21 }
  0xff   : > { %v602_v38 = vmul.f32 %v601_v13, %v595_v26  ;;  %v629_v39 = vmul.f32 %v628_v14, %v595_v26  ;;  %v656_v40 = vmul.f32 %v655_v15, %v595_v26  ;;  %v683_v41 = vmul.f32 %v682_v16, %v595_v26 }
 0x100   : > { %v710_v43 = vmul.f32 %v709_v17, %v595_v26  ;;  %v737_v44 = vmul.f32 %v736_v18, %v595_v26  ;;  %v764_v45 = vmul.f32 %v763_v19, %v595_v26  ;;  %v791_v59 = vmul.f32 %v790_v20, %v595_v26 }
 0x101   : > { %v597_v42 = vpop.permute.xlu0 %596  ;;  %v797_v14 = vstv %s1602_s0 }
 0x102   : > { %v598_v46 = vsel %vm1458_vm0, %v597_v42, %v1449_v0 }
 0x103   : > { %v605_v47 = vmul.f32 %v604_v22, %v598_v46  ;;  %v632_v48 = vmul.f32 %v631_v24, %v598_v46  ;;  %v659_v49 = vmul.f32 %v658_v27, %v598_v46  ;;  %v686_v50 = vmul.f32 %v685_v29, %v598_v46  ;;  %v583_v24 = vpop.permute.xlu1 %582 }
 0x104   : > { %v713_v51 = vmul.f32 %v712_v31, %v598_v46  ;;  %v740_v52 = vmul.f32 %v739_v33, %v598_v46  ;;  %v767_v53 = vmul.f32 %v766_v35, %v598_v46  ;;  %v794_v54 = vmul.f32 %v793_v37, %v598_v46 }
 0x105   : > { %v606_v55 = vadd.f32 %v605_v47, %v602_v38  ;;  %v633_v56 = vadd.f32 %v632_v48, %v629_v39  ;;  %v660_v57 = vadd.f32 %v659_v49, %v656_v40  ;;  %v687_v58 = vadd.f32 %v686_v50, %v683_v41 }
 0x106   : > { %v714_v60 = vadd.f32 %v713_v51, %v710_v43  ;;  %v741_v61 = vadd.f32 %v740_v52, %v737_v44  ;;  %v768_v62 = vadd.f32 %v767_v53, %v764_v45  ;;  %v795_v13 = vadd.f32 %v794_v54, %v791_v59  ;;  %v577_v45 = vpop.permute.xlu0 %576 }
 0x107   : > { %v1607_v1 = vadd.f32 %v608_v23, %v606_v55  ;;  %v1609_v2 = vadd.f32 %v635_v25, %v633_v56  ;;  %v1611_v3 = vadd.f32 %v662_v28, %v660_v57  ;;  %v1613_v5 = vadd.f32 %v689_v30, %v687_v58  ;;  %v587_v50 = vpop.permute.xlu1 %586 }
 0x108   : > { %v1615_v7 = vadd.f32 %v716_v32, %v714_v60  ;;  %v1617_v8 = vadd.f32 %v743_v34, %v741_v61  ;;  %v1624_v17 = vadd.f32 %v770_v36, %v768_v62  ;;  %v1635_v28 = vadd.f32 %v797_v14, %v795_v13 }
 0x109   : > { %v611_v9 = vmul.f32 0.044715, %v1607_v1  ;;  %v638_v10 = vmul.f32 0.044715, %v1609_v2  ;;  %v665_v15 = vmul.f32 0.044715, %v1611_v3  ;;  %v584_v36 = vsel %vm1458_vm0, %v581_v63, %v583_v24 }
 0x10a   : > { %v692_v16 = vmul.f32 0.044715, %v1613_v5  ;;  %v719_v20 = vmul.f32 0.044715, %v1615_v7  ;;  %v746_v23 = vmul.f32 0.044715, %v1617_v8  ;;  %v585_v53 = vmul.f32 %v584_v36, %v1464_v6 }
 0x10b   : > { %v612_v18 = vmul.f32 %v611_v9, %v1607_v1  ;;  %v639_v19 = vmul.f32 %v638_v10, %v1609_v2  ;;  %v666_v21 = vmul.f32 %v665_v15, %v1611_v3  ;;  %v773_v32 = vmul.f32 0.044715, %v1624_v17 }
 0x10c   : > { %v693_v22 = vmul.f32 %v692_v16, %v1613_v5  ;;  %v720_v27 = vmul.f32 %v719_v20, %v1615_v7  ;;  %v747_v31 = vmul.f32 %v746_v23, %v1617_v8  ;;  %v800_v44 = vmul.f32 0.044715, %v1635_v28 }
 0x10d   : > { %v613_v25 = vmul.f32 %v612_v18, %v1607_v1  ;;  %v640_v26 = vmul.f32 %v639_v19, %v1609_v2  ;;  %v667_v29 = vmul.f32 %v666_v21, %v1611_v3  ;;  %v774_v40 = vmul.f32 %v773_v32, %v1624_v17 }
 0x10e   : > { %v694_v30 = vmul.f32 %v693_v22, %v1613_v5  ;;  %v721_v35 = vmul.f32 %v720_v27, %v1615_v7  ;;  %v748_v39 = vmul.f32 %v747_v31, %v1617_v8  ;;  %v801_v52 = vmul.f32 %v800_v44, %v1635_v28 }
 0x10f   : > { %v614_v33 = vadd.f32 %v613_v25, %v1607_v1  ;;  %v641_v34 = vadd.f32 %v640_v26, %v1609_v2  ;;  %v668_v37 = vadd.f32 %v667_v29, %v1611_v3  ;;  %v775_v49 = vmul.f32 %v774_v40, %v1624_v17 }
 0x110   : > { %v695_v38 = vadd.f32 %v694_v30, %v1613_v5  ;;  %v722_v43 = vadd.f32 %v721_v35, %v1615_v7  ;;  %v749_v48 = vadd.f32 %v748_v39, %v1617_v8  ;;  %v578_v56 = vsel %vm1458_vm0, %v1478_v12, %v577_v45 }
 0x111   : > { %v615_v41 = vmul.f32 0.7978846, %v614_v33  ;;  %v642_v42 = vmul.f32 0.7978846, %v641_v34  ;;  %v669_v46 = vmul.f32 0.7978846, %v668_v37  ;;  %v776_v55 = vadd.f32 %v775_v49, %v1624_v17 }
 0x112   : > { %v696_v47 = vmul.f32 0.7978846, %v695_v38  ;;  %v723_v51 = vmul.f32 0.7978846, %v722_v43  ;;  %v750_v54 = vmul.f32 0.7978846, %v749_v48  ;;  %v802_v57 = vmul.f32 %v801_v52, %v1635_v28 }
 0x113   : > { %1117 = vtanh.f32 %v615_v41  ;;  %v579_v58 = vmul.f32 %v578_v56, %v1472_v11  ;;  %v588_v6 = vsel %vm1458_vm0, %v587_v50, %v1478_v12  ;;  %v777_v59 = vmul.f32 0.7978846, %v776_v55  ;;  %v573_v12 = vld [vmem:[%s1835_s10] sm:$0xff] }
 0x114   : > { %1119 = vtanh.f32 %v642_v42  ;;  %v589_v60 = vmul.f32 %v588_v6, %v585_v53  ;;  %v803_v11 = vadd.f32 %v802_v57, %v1635_v28  ;;  %v648_v9 = vstv %s1653_s1 }
 0x115   : > { %1121 = vtanh.f32 %v669_v46  ;;  %v649_v10 = vstv %s1658_s2  ;;  %v675_v13 = vstv %s1663_s3  ;;  %v676_v14 = vstv %s1670_s5 }
 0x116   : > { %1123 = vtanh.f32 %v696_v47  ;;  %v590_v61 = vsub.f32 %v579_v58, %v589_v60  ;;  %v804_v62 = vmul.f32 0.7978846, %v803_v11  ;;  %v621_v15 = vstv %s1678_s6 }
 0x117   : > { %1125 = vtanh.f32 %v723_v51  ;;  %v622_v16 = vstv %s1681_s7  ;;  %v650_v20 = vsel %vm1458_vm0, %v648_v9, %v649_v10  ;;  %v677_v21 = vsel %vm1458_vm0, %v675_v13, %v676_v14 }
 0x118   : > { %1127 = vtanh.f32 %v750_v54  ;;  %v591_v63 = vadd.f32 %v590_v61, %v573_v12  ;;  %v610_v22 = vmul.f32 0.5, %v1607_v1  ;;  %v702_v25 = vstv %s1688_s11 }
 0x119   : > { %1129 = vtanh.f32 %v777_v59  ;;  %v623_v26 = vsel %vm1458_vm0, %v621_v15, %v622_v16  ;;  %v637_v27 = vmul.f32 0.5, %v1609_v2  ;;  %v703_v31 = vstv %s1691_s19 }
 0x11a   : > { %1131 = vtanh.f32 %v804_v62  ;;  %592 = vst [vmem:[%s1835_s10] sm:$0xff] %v591_v63  ;;  %v664_v33 = vmul.f32 0.5, %v1611_v3  ;;  %v729_v35 = vstv %s1694_s20  ;;  %v691_v37 = vmul.f32 0.5, %v1613_v5 }
 0x11b   : > { %v730_v40 = vstv %s1700_s26  ;;  %v718_v3 = vmul.f32 0.5, %v1615_v7  ;;  %v704_v47 = vsel %vm1458_vm0, %v702_v25, %v703_v31  ;;  %v756_v48 = vstv %s1707_s30 }
 0x11c   : > { %v757_v49 = vstv %s1710_s18  ;;  %v745_v5 = vmul.f32 0.5, %v1617_v8  ;;  %v731_v55 = vsel %vm1458_vm0, %v729_v35, %v730_v40  ;;  %v783_v56 = vstv %s1715_s14 }
 0x11d   : > { %v784_v7 = vstv %s1722_s16  ;;  %v772_v57 = vmul.f32 0.5, %v1624_v17  ;;  %v758_v8 = vsel %vm1458_vm0, %v756_v48, %v757_v49  ;;  %v810_v11 = vstv %s1727_s17 }
 0x11e   : > { %v811_v12 = vstv %s1734_s4  ;;  %v799_v9 = vmul.f32 0.5, %v1635_v28  ;;  %v785_v10 = vsel %vm1458_vm0, %v783_v56, %v784_v7 }
 0x11f   : > { %v812_v15 = vsel %vm1458_vm0, %v810_v11, %v811_v12 }
 0x120   : > { %v1118_v18 = vpop.eup %1117 }
 0x121   : > { %v1120_v19 = vpop.eup %1119  ;;  %v617_v23 = vadd.f32 1.0, %v1118_v18 }
 0x122   : > { %v1122_v24 = vpop.eup %1121  ;;  %v644_v29 = vadd.f32 1.0, %v1120_v19 }
 0x123   : > { %v1124_v30 = vpop.eup %1123  ;;  %v618_v32 = vmul.f32 %v617_v23, %v610_v22  ;;  %v671_v1 = vadd.f32 1.0, %v1122_v24 }
 0x124   : > { %v1126_v34 = vpop.eup %1125  ;;  %v645_v36 = vmul.f32 %v644_v29, %v637_v27  ;;  %v698_v38 = vadd.f32 1.0, %v1124_v30 }
 0x125   : > { %v1128_v39 = vpop.eup %1127  ;;  %v624_v2 = vmul.f32 %v623_v26, %v618_v32  ;;  %v672_v41 = vmul.f32 %v671_v1, %v664_v33  ;;  %v725_v42 = vadd.f32 1.0, %v1126_v34 }
 0x126   : > { %v1130_v43 = vpop.eup %1129  ;;  %v651_v44 = vmul.f32 %v650_v20, %v645_v36  ;;  %v699_v45 = vmul.f32 %v698_v38, %v691_v37  ;;  %v752_v46 = vadd.f32 1.0, %v1128_v39 }
 0x127   : > { %v1132_v50 = vpop.eup %1131  ;;  %v678_v52 = vmul.f32 %v677_v21, %v672_v41  ;;  %v726_v53 = vmul.f32 %v725_v42, %v718_v3  ;;  %v779_v54 = vadd.f32 1.0, %v1130_v43  ;;  %v815_v21 = vld [vmem:[#allocation2] sm:$0xff] }
 0x128   : > { %v652_v51 = vadd.f32 %v651_v44, %v624_v2  ;;  %v705_v6 = vmul.f32 %v704_v47, %v699_v45  ;;  %v753_v59 = vmul.f32 %v752_v46, %v745_v5  ;;  %v806_v60 = vadd.f32 1.0, %v1132_v50 }
 0x129   : > { %v732_v62 = vmul.f32 %v731_v55, %v726_v53  ;;  %v780_v63 = vmul.f32 %v779_v54, %v772_v57 }
 0x12a   : > { %v679_v58 = vadd.f32 %v678_v52, %v652_v51  ;;  %v759_v14 = vmul.f32 %v758_v8, %v753_v59  ;;  %v807_v17 = vmul.f32 %v806_v60, %v799_v9 }
 0x12b   : > { %v786_v18 = vmul.f32 %v785_v10, %v780_v63 }
 0x12c   : > { %v706_v61 = vadd.f32 %v705_v6, %v679_v58  ;;  %v813_v20 = vmul.f32 %v812_v15, %v807_v17 }
 0x12e   : > { %v733_v13 = vadd.f32 %v732_v62, %v706_v61 }
 0x130   : > { %v760_v16 = vadd.f32 %v759_v14, %v733_v13 }
 0x132   : > { %v787_v19 = vadd.f32 %v786_v18, %v760_v16 }
 0x134   : > { %v814_v22 = vadd.f32 %v813_v20, %v787_v19  ;;  %821 = sbr.rel (%p1024_p2) target bundleno = 329 (0x149), region = 96 }
 0x136   : > { %v816_v23 = vadd.f32 %v815_v21, %v814_v22 }
 0x138   : > { %817 = vst [vmem:[#allocation2] sm:$0xff] %v816_v23 }
 0x139   : > { %v822_v28 = vld [vmem:[%s1837_s24] sm:$0xff]  ;;  %v830_v30 = vstv %s826_s29 }
 0x13a   : > { %v823_v4 = vld [vmem:[%s1838_s28] sm:$0xff] }
 0x13b   : > { %v824_v25 = vmul.f32 %v823_v4, %v822_v28 }
 0x13d   : > { %v825_v27 = vmul.f32 2.0, %v824_v25 }
 0x13f   : > { %v827_v24 = vld [vmem:[#allocation2] sm:$0xff] }
 0x140   : > { %v828_v26 = vmul.f32 0.1, %v827_v24 }
 0x142   : > { %v829_v29 = vadd.f32 %v828_v26, %v825_v27 }
 0x144   : > { %v831_v31 = vmul.f32 %v830_v30, %v829_v29 }
 0x146   : > { %v832_v32 = vsub.f32 %v1449_v0, %v831_v31 }
 0x148   : > { %833 = vst [vmem:[%s1838_s28] sm:$0xff] %v832_v32 }
 0x149 PF: > { %s1839_s1 = sld [smem:[#allocation20_spill]] }
 0x14a   : > { %s1840_s19 = sld [smem:[#allocation19_spill]] }
 0x14b   : > { %s1841_s20 = sld [smem:[#allocation21_spill]] }
 0x14f   : > { %s26_s21 = sadd.s32 1, %s1839_s1  }
 0x150   : > { %p23_p6 = scmp.ge.s32.totalorder %s26_s21, 6  }
 0x152   :  { %25 = sbr.rel (!%p23_p6) target bundleno = 18 (0x12), region = 136 }
 0x157   :  { %853 = vsyncpa [#allocation5], 1 }
 0x158   :  { %855 = vsyncpa [#allocation5 + $0x1], 1 }
 0x159   :  { %856 = vsyncpa [#allocation7], 1 }
 0x15a   :  { %857 = vsyncpa [#allocation10], 1 }
 0x15b   :  { %858 = vsyncpa [#allocation13], 1 }

</bundles_post_ra>
